<compile_context>
chip_gen: v7x
topology: tpu7x:2x2x1
jax: 0.10.0
libtpu: 0.0.40
codegen_flags: <defaults>
</compile_context>

<pallas_src>
import functools

import jax
import jax.numpy as jnp
from jax.experimental import pallas as pl
from jax.experimental.pallas import tpu as pltpu

# ---------------- model config (small, deterministic synthetic) ----------------
HIDDEN = 128
INTERMEDIATE = 256
NUM_HEADS = 4
NUM_KV_HEADS = 2
HEAD_DIM = HIDDEN // NUM_HEADS
NUM_EXPERTS = 4
TOP_K = 2
MAX_POS = 64
ATTN_MULT = 0.08838834764831845     # attn_output_multiplier
MAX_ATTN_VAL = 30.0
RMS_EPS = 1e-5


# ======================= in-kernel helpers =======================

def _rms_normalize(x, scale, eps):
    var = jnp.mean(x * x, axis=-1, keepdims=True)
    return x * jax.lax.rsqrt(var + eps) * scale


def _gelu_erf(x):
    # exact GELU: 0.5*x*(1+erf(x/sqrt(2))); erf via Abramowitz-Stegun 7.1.26
    # (max abs error ~1.5e-7) using only exp/mul/div/select (Mosaic-safe).
    z = x * 0.7071067811865476
    az = jnp.abs(z)
    t = 1.0 / (1.0 + 0.3275911 * az)
    poly = t * (0.254829592 + t * (-0.284496736 + t * (1.421413741
                + t * (-1.453152027 + t * 1.061405429))))
    erf_abs = 1.0 - poly * jnp.exp(-az * az)
    erf_z = jnp.where(z >= 0.0, erf_abs, -erf_abs)
    return 0.5 * x * (1.0 + erf_z)


# ======================= Pallas kernels =======================

def _attn_router_kernel(x_ref, pre_attn_s_ref, wqkv_ref, cos_ref, sin_ref,
                        wo_ref, post_attn_s_ref, pre_moe_s_ref, wg_ref,
                        xattn_ref, hs_ref, logits_ref,
                        *, eps, mult, max_val, nh, nkv, d):
    x = x_ref[...].astype(jnp.float32)                               # (S, H)

    # ---- pre-attention RMSNorm + fused QKV projection (one wide matmul) ----
    hs = _rms_normalize(x, pre_attn_s_ref[...].astype(jnp.float32), eps)
    qkv = jnp.dot(hs, wqkv_ref[...], preferred_element_type=jnp.float32)

    cos = cos_ref[...].astype(jnp.float32)                           # (S, d)
    sin = sin_ref[...].astype(jnp.float32)
    half = d // 2

    def rope(v):
        rot = jnp.concatenate([-v[:, half:], v[:, :half]], axis=-1)
        return v * cos + rot * sin

    k_off = nh * d
    v_off = (nh + nkv) * d
    group = nh // nkv

    # rotate each KV head once (shared by `group` query heads)
    k_heads, v_heads = [], []
    for j in range(nkv):
        k_heads.append(rope(qkv[:, k_off + j * d:k_off + (j + 1) * d]))
        v_heads.append(qkv[:, v_off + j * d:v_off + (j + 1) * d])

    ctx = []
    for h in range(nh):
        qh = rope(qkv[:, h * d:(h + 1) * d])
        kh = k_heads[h // group]
        vh = v_heads[h // group]
        s = jax.lax.dot_general(qh, kh, (((1,), (1,)), ((), ())),
                                preferred_element_type=jnp.float32)   # (S, S)
        s = max_val * jnp.tanh(s * mult)
        s = s - jnp.max(s, axis=-1, keepdims=True)
        p = jnp.exp(s)
        p = p / jnp.sum(p, axis=-1, keepdims=True)
        ctx.append(jnp.dot(p, vh, preferred_element_type=jnp.float32))
    ctx = jnp.concatenate(ctx, axis=-1)                               # (S, H)

    # ---- output projection + post-attn RMSNorm + residual (epilogue) ----
    attn_out = jnp.dot(ctx, wo_ref[...], preferred_element_type=jnp.float32)
    x2 = x + _rms_normalize(attn_out,
                            post_attn_s_ref[...].astype(jnp.float32), eps)
    xattn_ref[...] = x2.astype(xattn_ref.dtype)

    # ---- pre-MoE RMSNorm + router logits (folded into this kernel) ----
    hs2 = _rms_normalize(x2, pre_moe_s_ref[...].astype(jnp.float32), eps)
    hs_ref[...] = hs2.astype(hs_ref.dtype)        # bf16 HBM intermediate
    logits_ref[...] = jnp.dot(hs2, wg_ref[...],
                              preferred_element_type=jnp.float32)


def _moe_kernel(hs_ref, wgu_ref, wdn_ref, rw_ref, res_ref, post_s_ref,
                o_ref, acc_ref, *, eps, ffn):
    e = pl.program_id(0)

    @pl.when(e == 0)
    def _():
        acc_ref[...] = jnp.zeros_like(acc_ref)

    # gate|up in one bf16 matmul, exact GELU + gating + bf16 down matmul
    hs = hs_ref[...]                                                  # (T, H) bf16
    gu = jnp.dot(hs, wgu_ref[0], preferred_element_type=jnp.float32)  # (T, 2F)
    act = _gelu_erf(gu[:, :ffn]) * gu[:, ffn:]                        # f32
    down = jnp.dot(act.astype(jnp.bfloat16), wdn_ref[0],
                   preferred_element_type=jnp.float32)                # (T, H)
    acc_ref[...] += down * rw_ref[0]                                  # (T, 1) weight

    @pl.when(e == pl.num_programs(0) - 1)
    def _():
        moe_out = acc_ref[...]
        normed = _rms_normalize(moe_out,
                                post_s_ref[...].astype(jnp.float32), eps)
        o_ref[...] = (res_ref[...].astype(jnp.float32) + normed).astype(o_ref.dtype)


# ======================= DecoderLayer forward (Pallas) =======================

def prepare_params(params):
    """One-time weight packing: fuse QKV, concat gate|up expert weights,
    cast the FLOP-heavy expert weights to bf16, reshape norm scales."""
    return dict(
        pre_attn_scale=params["pre_attn_scale"].reshape(1, HIDDEN),
        post_attn_scale=params["post_attn_scale"].reshape(1, HIDDEN),
        pre_moe_scale=params["pre_moe_scale"].reshape(1, HIDDEN),
        post_moe_scale=params["post_moe_scale"].reshape(1, HIDDEN),
        w_qkv=jnp.concatenate([params["wq"], params["wk"], params["wv"]],
                              axis=1),
        wo=params["wo"],
        wg=params["wg"],
        w_gateup=jnp.concatenate([params["w_lin"], params["w_v"]],
                                 axis=2).astype(jnp.bfloat16),
        w_down=params["w_1"].astype(jnp.bfloat16),
    )


def decoder_layer_forward(x, prepped, position_ids, cos_cached, sin_cached):
    b, s, h = x.shape
    t = b * s
    d = HEAD_DIM
    qkv_width = (NUM_HEADS + 2 * NUM_KV_HEADS) * d

    x2d = x.reshape(t, h)
    cos_pos = cos_cached[position_ids].reshape(t, d)
    sin_pos = sin_cached[position_ids].reshape(t, d)

    # ---- kernel 1: attention block + pre-MoE norm + router logits ----
    x_attn, hs_moe, router_logits = pl.pallas_call(
        functools.partial(_attn_router_kernel, eps=RMS_EPS, mult=ATTN_MULT,
                          max_val=MAX_ATTN_VAL, nh=NUM_HEADS,
                          nkv=NUM_KV_HEADS, d=d),
        grid=(b,),
        in_specs=[
            pl.BlockSpec((s, h), lambda bi: (bi, 0)),            # x (residual)
            pl.BlockSpec((1, h), lambda bi: (0, 0)),             # pre_attn_scale
            pl.BlockSpec((h, qkv_width), lambda bi: (0, 0)),     # fused w_qkv
            pl.BlockSpec((s, d), lambda bi: (bi, 0)),            # cos
            pl.BlockSpec((s, d), lambda bi: (bi, 0)),            # sin
            pl.BlockSpec((h, h), lambda bi: (0, 0)),             # wo
            pl.BlockSpec((1, h), lambda bi: (0, 0)),             # post_attn_scale
            pl.BlockSpec((1, h), lambda bi: (0, 0)),             # pre_moe_scale
            pl.BlockSpec((h, NUM_EXPERTS), lambda bi: (0, 0)),   # wg (router)
        ],
        out_specs=[
            pl.BlockSpec((s, h), lambda bi: (bi, 0)),
            pl.BlockSpec((s, h), lambda bi: (bi, 0)),
            pl.BlockSpec((s, NUM_EXPERTS), lambda bi: (bi, 0)),
        ],
        out_shape=[
            jax.ShapeDtypeStruct((t, h), jnp.float32),            # residual-in for MoE
            jax.ShapeDtypeStruct((t, h), jnp.bfloat16),           # pre-MoE normed hs
            jax.ShapeDtypeStruct((t, NUM_EXPERTS), jnp.float32),  # router logits
        ],
        compiler_params=pltpu.CompilerParams(
            dimension_semantics=("parallel",)),
    )(x2d, prepped["pre_attn_scale"], prepped["w_qkv"], cos_pos, sin_pos,
      prepped["wo"], prepped["post_attn_scale"], prepped["pre_moe_scale"],
      prepped["wg"])

    # ---- routing glue (tiny (T, E) tensors; torch.topk semantics) ----
    rw = jax.nn.softmax(router_logits, axis=-1)
    top_w, top_i = jax.lax.top_k(rw, TOP_K)
    dense_rw = jnp.sum(
        jax.nn.one_hot(top_i, NUM_EXPERTS, dtype=jnp.float32) * top_w[..., None],
        axis=1)                                                   # (T, E)
    rw_e = dense_rw.T.reshape(NUM_EXPERTS, t, 1)

    # ---- kernel 2: fused MoE + post-MoE norm + residual ----
    out2d = pl.pallas_call(
        functools.partial(_moe_kernel, eps=RMS_EPS, ffn=INTERMEDIATE),
        grid=(NUM_EXPERTS,),
        in_specs=[
            pl.BlockSpec((t, h), lambda e: (0, 0)),                       # hs (bf16)
            pl.BlockSpec((1, h, 2 * INTERMEDIATE), lambda e: (e, 0, 0)),  # gate|up w
            pl.BlockSpec((1, INTERMEDIATE, h), lambda e: (e, 0, 0)),      # down w
            pl.BlockSpec((1, t, 1), lambda e: (e, 0, 0)),                 # routing w
            pl.BlockSpec((t, h), lambda e: (0, 0)),                       # residual
            pl.BlockSpec((1, h), lambda e: (0, 0)),                       # post_moe_scale
        ],
        out_specs=pl.BlockSpec((t, h), lambda e: (0, 0)),
        out_shape=jax.ShapeDtypeStruct((t, h), jnp.float32),
        scratch_shapes=[pltpu.VMEM((t, h), jnp.float32)],
        compiler_params=pltpu.CompilerParams(
            dimension_semantics=("arbitrary",)),
    )(hs_moe, prepped["w_gateup"], prepped["w_down"], rw_e, x_attn,
      prepped["post_moe_scale"])

    return out2d.reshape(b, s, h)


# ======================= pure-JAX reference =======================

def _ref_rmsnorm(h, scale):
    hf = h.astype(jnp.float32)
    var = jnp.mean(hf * hf, axis=-1, keepdims=True)
    return (scale * (hf * jax.lax.rsqrt(var + RMS_EPS))).astype(h.dtype)


def _ref_rotate_half(x):
    d = x.shape[-1] // 2
    return jnp.concatenate([-x[..., d:], x[..., :d]], axis=-1)


def reference_forward(x, params, position_ids, cos_cached, sin_cached):
    b, s, h = x.shape
    residual = x
    hs = _ref_rmsnorm(x, params["pre_attn_scale"])
    q = (hs @ params["wq"]).reshape(b, s, NUM_HEADS, HEAD_DIM).transpose(0, 2, 1, 3)
    k = (hs @ params["wk"]).reshape(b, s, NUM_KV_HEADS, HEAD_DIM).transpose(0, 2, 1, 3)
    v = (hs @ params["wv"]).reshape(b, s, NUM_KV_HEADS, HEAD_DIM).transpose(0, 2, 1, 3)
    cos = cos_cached[position_ids][:, None]     # (B, 1, S, D)
    sin = sin_cached[position_ids][:, None]
    q = q * cos + _ref_rotate_half(q) * sin
    k = k * cos + _ref_rotate_half(k) * sin
    rep = NUM_HEADS // NUM_KV_HEADS
    k = jnp.repeat(k, rep, axis=1)
    v = jnp.repeat(v, rep, axis=1)
    scores = jnp.einsum("bhqd,bhkd->bhqk", q, k).astype(jnp.float32) * ATTN_MULT
    scores = MAX_ATTN_VAL * jnp.tanh(scores)
    probs = jax.nn.softmax(scores, axis=-1)
    o = jnp.einsum("bhqk,bhkd->bhqd", probs, v)
    o = o.transpose(0, 2, 1, 3).reshape(b, s, h) @ params["wo"]
    hs = _ref_rmsnorm(o, params["post_attn_scale"])
    x = residual + hs

    residual = x
    hs = _ref_rmsnorm(x, params["pre_moe_scale"])
    flat = hs.reshape(-1, h)
    logits = flat @ params["wg"]
    rw = jax.nn.softmax(logits.astype(jnp.float32), axis=-1)
    top_w, top_i = jax.lax.top_k(rw, TOP_K)
    dense = jnp.sum(
        jax.nn.one_hot(top_i, NUM_EXPERTS, dtype=jnp.float32) * top_w[..., None],
        axis=1)
    moe_out = jnp.zeros_like(flat)
    for e in range(NUM_EXPERTS):
        ge = jax.nn.gelu(flat @ params["w_lin"][e], approximate=False)
        ue = flat @ params["w_v"][e]
        oe = (ge * ue) @ params["w_1"][e]
        moe_out = moe_out + oe * dense[:, e:e + 1]
    moe_out = moe_out.reshape(b, s, h)
    hs = _ref_rmsnorm(moe_out, params["post_moe_scale"])
    return residual + hs


# ======================= setup =======================

def build_rope_cache(max_pos, dim):
    inv_freq = 1.0 / (10000.0 ** (jnp.arange(0, dim, 2, dtype=jnp.float32) / dim))
    t = jnp.arange(max_pos, dtype=jnp.float32)
    freqs = jnp.outer(t, inv_freq)
    emb = jnp.concatenate([freqs, freqs], axis=-1)
    return jnp.cos(emb), jnp.sin(emb)


def init_params(key):
    ks = jax.random.split(key, 12)

    def w(k, shape, scale=0.05):
        return scale * jax.random.normal(k, shape, dtype=jnp.float32)

    # RMSNorm scales initialized ~1 (torch init is zeros, which would zero the
    # signal; this is a synthetic, deterministic, non-degenerate init).
    return dict(
        pre_attn_scale=1.0 + 0.1 * jax.random.normal(ks[0], (HIDDEN,), jnp.float32),
        post_attn_scale=1.0 + 0.1 * jax.random.normal(ks[1], (HIDDEN,), jnp.float32),
        pre_moe_scale=1.0 + 0.1 * jax.random.normal(ks[2], (HIDDEN,), jnp.float32),
        post_moe_scale=1.0 + 0.1 * jax.random.normal(ks[3], (HIDDEN,), jnp.float32),
        wq=w(ks[4], (HIDDEN, NUM_HEADS * HEAD_DIM)),
        wk=w(ks[5], (HIDDEN, NUM_KV_HEADS * HEAD_DIM)),
        wv=w(ks[6], (HIDDEN, NUM_KV_HEADS * HEAD_DIM)),
        wo=w(ks[7], (NUM_HEADS * HEAD_DIM, HIDDEN)),
        wg=w(ks[8], (HIDDEN, NUM_EXPERTS)),
        w_lin=w(ks[9], (NUM_EXPERTS, HIDDEN, INTERMEDIATE)),
        w_v=w(ks[10], (NUM_EXPERTS, HIDDEN, INTERMEDIATE)),
        w_1=w(ks[11], (NUM_EXPERTS, INTERMEDIATE, HIDDEN)),
    )


if __name__ == "__main__":
    key = jax.random.PRNGKey(0)
    k_x, k_p = jax.random.split(key)

    B, S = 2, 16
    x = jax.random.normal(k_x, (B, S, HIDDEN), dtype=jnp.float32)
    params = init_params(k_p)
    prepped = prepare_params(params)
    position_ids = jnp.broadcast_to(jnp.arange(S, dtype=jnp.int32), (B, S))
    cos_cached, sin_cached = build_rope_cache(MAX_POS, HEAD_DIM)

    fwd = jax.jit(decoder_layer_forward)
    out = jax.block_until_ready(fwd(x, prepped, position_ids, cos_cached, sin_cached))

    with jax.default_matmul_precision("highest"):
        ref = reference_forward(x, params, position_ids, cos_cached, sin_cached)
    ref = jax.block_until_ready(ref)

    rel_err = float(jnp.linalg.norm(out - ref) / (jnp.linalg.norm(ref) + 1e-12))
    assert out.shape == (B, S, HIDDEN)
    assert rel_err < 3e-2, f"relative L2 error too large: {rel_err}"

    print("KERNEL_OK")
</pallas_src>

<mosaic_0001>
module attributes {stable_mosaic.version = 11 : i64} {
  func.func @_moe_kernel(%arg0: i32, %arg1: memref<32x128xbf16, #tpu.memory_space<vmem>>, %arg2: memref<1x128x512xbf16, #tpu.memory_space<vmem>>, %arg3: memref<1x256x128xbf16, #tpu.memory_space<vmem>>, %arg4: memref<1x32x1xf32, #tpu.memory_space<vmem>>, %arg5: memref<32x128xf32, #tpu.memory_space<vmem>>, %arg6: memref<1x128xf32, #tpu.memory_space<vmem>>, %arg7: memref<32x128xf32, #tpu.memory_space<vmem>>, %arg8: memref<32x128xf32, #tpu.memory_space<vmem>>) attributes {dimension_semantics = [#tpu.dimension_semantics<arbitrary>], iteration_bounds = array<i64: 4>, scalar_prefetch = 0 : i64, scratch_operands = 1 : i64, tpu.core_type = #tpu.core_type<tc>, window_params = [{pipeline_mode = #tpu.pipeline_mode<synchronous>, transform_indices = @transform_0, window_bounds = array<i64: 32, 128>}, {transform_indices = @transform_1, window_bounds = array<i64: 1, 128, 512>}, {transform_indices = @transform_2, window_bounds = array<i64: 1, 256, 128>}, {transform_indices = @transform_3, window_bounds = array<i64: 1, 32, 1>}, {pipeline_mode = #tpu.pipeline_mode<synchronous>, transform_indices = @transform_4, window_bounds = array<i64: 32, 128>}, {pipeline_mode = #tpu.pipeline_mode<synchronous>, transform_indices = @transform_5, window_bounds = array<i64: 1, 128>}, {pipeline_mode = #tpu.pipeline_mode<synchronous>, transform_indices = @transform_6, window_bounds = array<i64: 32, 128>}]} {
    %c0_i32 = arith.constant 0 : i32
    %0 = arith.cmpi eq, %arg0, %c0_i32 : i32
    %1 = arith.extui %0 : i1 to i32
    %c0_i32_0 = arith.constant 0 : i32
    %2 = arith.cmpi ne, %1, %c0_i32_0 : i32
    scf.if %2 {
      %cst_32 = arith.constant 0.000000e+00 : f32
      %64 = vector.broadcast %cst_32 : f32 to vector<32x128xf32>
      %c0_33 = arith.constant 0 : index
      %c0_34 = arith.constant 0 : index
      %65 = vector.load %arg8[%c0_33, %c0_34] : memref<32x128xf32, #tpu.memory_space<vmem>>, vector<32x128xf32>
      tpu.vector_store %arg8[%c0_33, %c0_34], %64 {strides = array<i32>} : memref<32x128xf32, #tpu.memory_space<vmem>>, vector<32x128xf32>,
    } else {
    }
    %c0 = arith.constant 0 : index
    %c0_1 = arith.constant 0 : index
    %3 = vector.load %arg1[%c0, %c0_1] : memref<32x128xbf16, #tpu.memory_space<vmem>>, vector<32x128xbf16>
    %c0_2 = arith.constant 0 : index
    %c0_3 = arith.constant 0 : index
    %c0_4 = arith.constant 0 : index
    %4 = vector.load %arg2[%c0_2, %c0_3, %c0_4] : memref<1x128x512xbf16, #tpu.memory_space<vmem>>, vector<1x128x512xbf16>
    %5 = vector.shape_cast %4 : vector<1x128x512xbf16> to vector<128x512xbf16>
    %cst = arith.constant dense<0.000000e+00> : vector<32x512xf32>
    %6 = tpu.matmul %3, %5, %cst {dimension_numbers = #tpu.dot_dimension_numbers<[1], [0], [0], [1], [0, 0, 1, 1], [], []>} : vector<32x128xbf16>, vector<128x512xbf16>, vector<32x512xf32> -> vector<32x512xf32>
    %7 = vector.extract_strided_slice %6 {offsets = [0, 0], sizes = [32, 256], strides = [1, 1]} : vector<32x512xf32> to vector<32x256xf32>
    %cst_5 = arith.constant 0.707106769 : f32
    %8 = vector.broadcast %cst_5 : f32 to vector<32x256xf32>
    %9 = arith.mulf %7, %8 : vector<32x256xf32>
    %10 = math.absf %9 : vector<32x256xf32>
    %cst_6 = arith.constant 0.327591091 : f32
    %11 = vector.broadcast %cst_6 : f32 to vector<32x256xf32>
    %12 = arith.mulf %11, %10 : vector<32x256xf32>
    %cst_7 = arith.constant 1.000000e+00 : f32
    %13 = vector.broadcast %cst_7 : f32 to vector<32x256xf32>
    %14 = arith.addf %13, %12 : vector<32x256xf32>
    %cst_8 = arith.constant 1.000000e+00 : f32
    %15 = vector.broadcast %cst_8 : f32 to vector<32x256xf32>
    %16 = arith.divf %15, %14 : vector<32x256xf32>
    %cst_9 = arith.constant 1.06140542 : f32
    %17 = vector.broadcast %cst_9 : f32 to vector<32x256xf32>
    %18 = arith.mulf %16, %17 : vector<32x256xf32>
    %cst_10 = arith.constant -1.45315206 : f32
    %19 = vector.broadcast %cst_10 : f32 to vector<32x256xf32>
    %20 = arith.addf %19, %18 : vector<32x256xf32>
    %21 = arith.mulf %16, %20 : vector<32x256xf32>
    %cst_11 = arith.constant 1.42141378 : f32
    %22 = vector.broadcast %cst_11 : f32 to vector<32x256xf32>
    %23 = arith.addf %22, %21 : vector<32x256xf32>
    %24 = arith.mulf %16, %23 : vector<32x256xf32>
    %cst_12 = arith.constant -0.284496725 : f32
    %25 = vector.broadcast %cst_12 : f32 to vector<32x256xf32>
    %26 = arith.addf %25, %24 : vector<32x256xf32>
    %27 = arith.mulf %16, %26 : vector<32x256xf32>
    %cst_13 = arith.constant 0.254829586 : f32
    %28 = vector.broadcast %cst_13 : f32 to vector<32x256xf32>
    %29 = arith.addf %28, %27 : vector<32x256xf32>
    %30 = arith.mulf %16, %29 : vector<32x256xf32>
    %cst_14 = arith.constant 0.000000e+00 : f32
    %31 = vector.broadcast %cst_14 : f32 to vector<32x256xf32>
    %32 = arith.subf %31, %10 : vector<32x256xf32>
    %33 = arith.mulf %32, %10 : vector<32x256xf32>
    %34 = math.exp %33 : vector<32x256xf32>
    %35 = arith.mulf %30, %34 : vector<32x256xf32>
    %cst_15 = arith.constant 1.000000e+00 : f32
    %36 = vector.broadcast %cst_15 : f32 to vector<32x256xf32>
    %37 = arith.subf %36, %35 : vector<32x256xf32>
    %cst_16 = arith.constant 0.000000e+00 : f32
    %38 = vector.broadcast %cst_16 : f32 to vector<32x256xf32>
    %39 = arith.cmpf oge, %9, %38 : vector<32x256xf32>
    %cst_17 = arith.constant 0.000000e+00 : f32
    %40 = vector.broadcast %cst_17 : f32 to vector<32x256xf32>
    %41 = arith.subf %40, %37 : vector<32x256xf32>
    %42 = arith.select %39, %37, %41 : vector<32x256xi1>, vector<32x256xf32>
    %cst_18 = arith.constant 5.000000e-01 : f32
    %43 = vector.broadcast %cst_18 : f32 to vector<32x256xf32>
    %44 = arith.mulf %43, %7 : vector<32x256xf32>
    %cst_19 = arith.constant 1.000000e+00 : f32
    %45 = vector.broadcast %cst_19 : f32 to vector<32x256xf32>
    %46 = arith.addf %45, %42 : vector<32x256xf32>
    %47 = arith.mulf %44, %46 : vector<32x256xf32>
    %48 = vector.extract_strided_slice %6 {offsets = [0, 256], sizes = [32, 256], strides = [1, 1]} : vector<32x512xf32> to vector<32x256xf32>
    %49 = arith.mulf %47, %48 : vector<32x256xf32>
    %50 = arith.truncf %49 : vector<32x256xf32> to vector<32x256xbf16>
    %c0_20 = arith.constant 0 : index
    %c0_21 = arith.constant 0 : index
    %c0_22 = arith.constant 0 : index
    %51 = vector.load %arg3[%c0_20, %c0_21, %c0_22] : memref<1x256x128xbf16, #tpu.memory_space<vmem>>, vector<1x256x128xbf16>
    %52 = vector.shape_cast %51 : vector<1x256x128xbf16> to vector<256x128xbf16>
    %cst_23 = arith.constant dense<0.000000e+00> : vector<32x128xf32>
    %53 = tpu.matmul %50, %52, %cst_23 {dimension_numbers = #tpu.dot_dimension_numbers<[1], [0], [0], [1], [0, 0, 1, 1], [], []>} : vector<32x256xbf16>, vector<256x128xbf16>, vector<32x128xf32> -> vector<32x128xf32>
    %c0_24 = arith.constant 0 : index
    %c0_25 = arith.constant 0 : index
    %54 = vector.load %arg8[%c0_24, %c0_25] : memref<32x128xf32, #tpu.memory_space<vmem>>, vector<32x128xf32>
    %c0_26 = arith.constant 0 : index
    %c0_27 = arith.constant 0 : index
    %c0_28 = arith.constant 0 : index
    %55 = vector.load %arg4[%c0_26, %c0_27, %c0_28] : memref<1x32x1xf32, #tpu.memory_space<vmem>>, vector<1x32x1xf32>
    %56 = vector.shape_cast %55 : vector<1x32x1xf32> to vector<32x1xf32>
    %57 = vector.broadcast %56 : vector<32x1xf32> to vector<32x128xf32>
    %58 = arith.mulf %53, %57 : vector<32x128xf32>
    %59 = arith.addf %54, %58 : vector<32x128xf32>
    %c0_29 = arith.constant 0 : index
    %c0_30 = arith.constant 0 : index
    %60 = vector.load %arg8[%c0_29, %c0_30] : memref<32x128xf32, #tpu.memory_space<vmem>>, vector<32x128xf32>
    tpu.vector_store %arg8[%c0_29, %c0_30], %59 {strides = array<i32>} : memref<32x128xf32, #tpu.memory_space<vmem>>, vector<32x128xf32>,
    %c3_i32 = arith.constant 3 : i32
    %61 = arith.cmpi eq, %arg0, %c3_i32 : i32
    %62 = arith.extui %61 : i1 to i32
    %c0_i32_31 = arith.constant 0 : i32
    %63 = arith.cmpi ne, %62, %c0_i32_31 : i32
    scf.if %63 {
      %c0_32 = arith.constant 0 : index
      %c0_33 = arith.constant 0 : index
      %64 = vector.load %arg8[%c0_32, %c0_33] : memref<32x128xf32, #tpu.memory_space<vmem>>, vector<32x128xf32>
      %c0_34 = arith.constant 0 : index
      %c0_35 = arith.constant 0 : index
      %65 = vector.load %arg6[%c0_34, %c0_35] : memref<1x128xf32, #tpu.memory_space<vmem>>, vector<1x128xf32>
      %66 = arith.mulf %64, %64 : vector<32x128xf32>
      %cst_36 = arith.constant dense<0.000000e+00> : vector<32xf32>
      %67 = vector.multi_reduction <add>, %66, %cst_36 [1] : vector<32x128xf32> to vector<32xf32>
      %68 = vector.shape_cast %67 : vector<32xf32> to vector<32x1xf32>
      %cst_37 = arith.constant 1.280000e+02 : f32
      %69 = vector.broadcast %cst_37 : f32 to vector<32x1xf32>
      %70 = arith.divf %68, %69 : vector<32x1xf32>
      %cst_38 = arith.constant 9.99999974E-6 : f32
      %71 = vector.broadcast %cst_38 : f32 to vector<32x1xf32>
      %72 = arith.addf %70, %71 : vector<32x1xf32>
      %73 = math.rsqrt %72 : vector<32x1xf32>
      %74 = vector.broadcast %73 : vector<32x1xf32> to vector<32x128xf32>
      %75 = arith.mulf %64, %74 : vector<32x128xf32>
      %76 = vector.broadcast %65 : vector<1x128xf32> to vector<32x128xf32>
      %77 = arith.mulf %75, %76 : vector<32x128xf32>
      %c0_39 = arith.constant 0 : index
      %c0_40 = arith.constant 0 : index
      %78 = vector.load %arg5[%c0_39, %c0_40] : memref<32x128xf32, #tpu.memory_space<vmem>>, vector<32x128xf32>
      %79 = arith.addf %78, %77 : vector<32x128xf32>
      %c0_41 = arith.constant 0 : index
      %c0_42 = arith.constant 0 : index
      %80 = vector.load %arg7[%c0_41, %c0_42] : memref<32x128xf32, #tpu.memory_space<vmem>>, vector<32x128xf32>
      tpu.vector_store %arg7[%c0_41, %c0_42], %79 {strides = array<i32>} : memref<32x128xf32, #tpu.memory_space<vmem>>, vector<32x128xf32>,
    } else {
    }
    return
  }
  func.func @transform_0(%arg0: i32) -> (i32, i32) {
    %c0_i32 = arith.constant 0 : i32
    %c0_i32_0 = arith.constant 0 : i32
    %c0_i32_1 = arith.constant 0 : i32
    return %c0_i32, %c0_i32_0 : i32, i32
  }
  func.func @transform_1(%arg0: i32) -> (i32, i32, i32) {
    %c0_i32 = arith.constant 0 : i32
    %c0_i32_0 = arith.constant 0 : i32
    %c0_i32_1 = arith.constant 0 : i32
    return %arg0, %c0_i32, %c0_i32_0 : i32, i32, i32
  }
  func.func @transform_2(%arg0: i32) -> (i32, i32, i32) {
    %c0_i32 = arith.constant 0 : i32
    %c0_i32_0 = arith.constant 0 : i32
    %c0_i32_1 = arith.constant 0 : i32
    return %arg0, %c0_i32, %c0_i32_0 : i32, i32, i32
  }
  func.func @transform_3(%arg0: i32) -> (i32, i32, i32) {
    %c0_i32 = arith.constant 0 : i32
    %c0_i32_0 = arith.constant 0 : i32
    %c0_i32_1 = arith.constant 0 : i32
    return %arg0, %c0_i32, %c0_i32_0 : i32, i32, i32
  }
  func.func @transform_4(%arg0: i32) -> (i32, i32) {
    %c0_i32 = arith.constant 0 : i32
    %c0_i32_0 = arith.constant 0 : i32
    %c0_i32_1 = arith.constant 0 : i32
    return %c0_i32, %c0_i32_0 : i32, i32
  }
  func.func @transform_5(%arg0: i32) -> (i32, i32) {
    %c0_i32 = arith.constant 0 : i32
    %c0_i32_0 = arith.constant 0 : i32
    %c0_i32_1 = arith.constant 0 : i32
    return %c0_i32, %c0_i32_0 : i32, i32
  }
  func.func @transform_6(%arg0: i32) -> (i32, i32) {
    %c0_i32 = arith.constant 0 : i32
    %c0_i32_0 = arith.constant 0 : i32
    %c0_i32_1 = arith.constant 0 : i32
    return %c0_i32, %c0_i32_0 : i32, i32
  }
}

module attributes {stable_mosaic.version = 11 : i64} {
  func.func @_attn_router_kernel(%arg0: i32, %arg1: memref<16x128xf32, #tpu.memory_space<vmem>>, %arg2: memref<1x128xf32, #tpu.memory_space<vmem>>, %arg3: memref<128x256xf32, #tpu.memory_space<vmem>>, %arg4: memref<16x32xf32, #tpu.memory_space<vmem>>, %arg5: memref<16x32xf32, #tpu.memory_space<vmem>>, %arg6: memref<128x128xf32, #tpu.memory_space<vmem>>, %arg7: memref<1x128xf32, #tpu.memory_space<vmem>>, %arg8: memref<1x128xf32, #tpu.memory_space<vmem>>, %arg9: memref<128x4xf32, #tpu.memory_space<vmem>>, %arg10: memref<16x128xf32, #tpu.memory_space<vmem>>, %arg11: memref<16x128xbf16, #tpu.memory_space<vmem>>, %arg12: memref<16x4xf32, #tpu.memory_space<vmem>>) attributes {dimension_semantics = [#tpu.dimension_semantics<parallel>], iteration_bounds = array<i64: 2>, scalar_prefetch = 0 : i64, scratch_operands = 0 : i64, tpu.core_type = #tpu.core_type<tc>, window_params = [{transform_indices = @transform_0, window_bounds = array<i64: 16, 128>}, {pipeline_mode = #tpu.pipeline_mode<synchronous>, transform_indices = @transform_1, window_bounds = array<i64: 1, 128>}, {pipeline_mode = #tpu.pipeline_mode<synchronous>, transform_indices = @transform_2, window_bounds = array<i64: 128, 256>}, {transform_indices = @transform_3, window_bounds = array<i64: 16, 32>}, {transform_indices = @transform_4, window_bounds = array<i64: 16, 32>}, {pipeline_mode = #tpu.pipeline_mode<synchronous>, transform_indices = @transform_5, window_bounds = array<i64: 128, 128>}, {pipeline_mode = #tpu.pipeline_mode<synchronous>, transform_indices = @transform_6, window_bounds = array<i64: 1, 128>}, {pipeline_mode = #tpu.pipeline_mode<synchronous>, transform_indices = @transform_7, window_bounds = array<i64: 1, 128>}, {pipeline_mode = #tpu.pipeline_mode<synchronous>, transform_indices = @transform_8, window_bounds = array<i64: 128, 4>}, {transform_indices = @transform_9, window_bounds = array<i64: 16, 128>}, {transform_indices = @transform_10, window_bounds = array<i64: 16, 128>}, {transform_indices = @transform_11, window_bounds = array<i64: 16, 4>}]} {
    %c0 = arith.constant 0 : index
    %c0_0 = arith.constant 0 : index
    %0 = vector.load %arg1[%c0, %c0_0] : memref<16x128xf32, #tpu.memory_space<vmem>>, vector<16x128xf32>
    %c0_1 = arith.constant 0 : index
    %c0_2 = arith.constant 0 : index
    %1 = vector.load %arg2[%c0_1, %c0_2] : memref<1x128xf32, #tpu.memory_space<vmem>>, vector<1x128xf32>
    %2 = arith.mulf %0, %0 : vector<16x128xf32>
    %cst = arith.constant dense<0.000000e+00> : vector<16xf32>
    %3 = vector.multi_reduction <add>, %2, %cst [1] : vector<16x128xf32> to vector<16xf32>
    %4 = vector.shape_cast %3 : vector<16xf32> to vector<16x1xf32>
    %cst_3 = arith.constant 1.280000e+02 : f32
    %5 = vector.broadcast %cst_3 : f32 to vector<16x1xf32>
    %6 = arith.divf %4, %5 : vector<16x1xf32>
    %cst_4 = arith.constant 9.99999974E-6 : f32
    %7 = vector.broadcast %cst_4 : f32 to vector<16x1xf32>
    %8 = arith.addf %6, %7 : vector<16x1xf32>
    %9 = math.rsqrt %8 : vector<16x1xf32>
    %10 = vector.broadcast %9 : vector<16x1xf32> to vector<16x128xf32>
    %11 = arith.mulf %0, %10 : vector<16x128xf32>
    %12 = vector.broadcast %1 : vector<1x128xf32> to vector<16x128xf32>
    %13 = arith.mulf %11, %12 : vector<16x128xf32>
    %c0_5 = arith.constant 0 : index
    %c0_6 = arith.constant 0 : index
    %14 = vector.load %arg3[%c0_5, %c0_6] : memref<128x256xf32, #tpu.memory_space<vmem>>, vector<128x256xf32>
    %cst_7 = arith.constant dense<0.000000e+00> : vector<16x256xf32>
    %15 = tpu.matmul %13, %14, %cst_7 {dimension_numbers = #tpu.dot_dimension_numbers<[1], [0], [0], [1], [0, 0, 1, 1], [], []>} : vector<16x128xf32>, vector<128x256xf32>, vector<16x256xf32> -> vector<16x256xf32>
    %c0_8 = arith.constant 0 : index
    %c0_9 = arith.constant 0 : index
    %16 = vector.load %arg4[%c0_8, %c0_9] : memref<16x32xf32, #tpu.memory_space<vmem>>, vector<16x32xf32>
    %c0_10 = arith.constant 0 : index
    %c0_11 = arith.constant 0 : index
    %17 = vector.load %arg5[%c0_10, %c0_11] : memref<16x32xf32, #tpu.memory_space<vmem>>, vector<16x32xf32>
    %18 = vector.extract_strided_slice %15 {offsets = [0, 128], sizes = [16, 32], strides = [1, 1]} : vector<16x256xf32> to vector<16x32xf32>
    %19 = vector.extract_strided_slice %18 {offsets = [0, 16], sizes = [16, 16], strides = [1, 1]} : vector<16x32xf32> to vector<16x16xf32>
    %cst_12 = arith.constant 0.000000e+00 : f32
    %20 = vector.broadcast %cst_12 : f32 to vector<16x16xf32>
    %21 = arith.subf %20, %19 : vector<16x16xf32>
    %22 = vector.extract_strided_slice %18 {offsets = [0, 0], sizes = [16, 16], strides = [1, 1]} : vector<16x32xf32> to vector<16x16xf32>
    %23 = tpu.concatenate %21, %22 in 1 : vector<16x16xf32>, vector<16x16xf32> -> vector<16x32xf32>
    %24 = arith.mulf %18, %16 : vector<16x32xf32>
    %25 = arith.mulf %23, %17 : vector<16x32xf32>
    %26 = arith.addf %24, %25 : vector<16x32xf32>
    %27 = vector.extract_strided_slice %15 {offsets = [0, 192], sizes = [16, 32], strides = [1, 1]} : vector<16x256xf32> to vector<16x32xf32>
    %28 = vector.extract_strided_slice %15 {offsets = [0, 160], sizes = [16, 32], strides = [1, 1]} : vector<16x256xf32> to vector<16x32xf32>
    %29 = vector.extract_strided_slice %28 {offsets = [0, 16], sizes = [16, 16], strides = [1, 1]} : vector<16x32xf32> to vector<16x16xf32>
    %cst_13 = arith.constant 0.000000e+00 : f32
    %30 = vector.broadcast %cst_13 : f32 to vector<16x16xf32>
    %31 = arith.subf %30, %29 : vector<16x16xf32>
    %32 = vector.extract_strided_slice %28 {offsets = [0, 0], sizes = [16, 16], strides = [1, 1]} : vector<16x32xf32> to vector<16x16xf32>
    %33 = tpu.concatenate %31, %32 in 1 : vector<16x16xf32>, vector<16x16xf32> -> vector<16x32xf32>
    %34 = arith.mulf %28, %16 : vector<16x32xf32>
    %35 = arith.mulf %33, %17 : vector<16x32xf32>
    %36 = arith.addf %34, %35 : vector<16x32xf32>
    %37 = vector.extract_strided_slice %15 {offsets = [0, 224], sizes = [16, 32], strides = [1, 1]} : vector<16x256xf32> to vector<16x32xf32>
    %38 = vector.extract_strided_slice %15 {offsets = [0, 0], sizes = [16, 32], strides = [1, 1]} : vector<16x256xf32> to vector<16x32xf32>
    %39 = vector.extract_strided_slice %38 {offsets = [0, 16], sizes = [16, 16], strides = [1, 1]} : vector<16x32xf32> to vector<16x16xf32>
    %cst_14 = arith.constant 0.000000e+00 : f32
    %40 = vector.broadcast %cst_14 : f32 to vector<16x16xf32>
    %41 = arith.subf %40, %39 : vector<16x16xf32>
    %42 = vector.extract_strided_slice %38 {offsets = [0, 0], sizes = [16, 16], strides = [1, 1]} : vector<16x32xf32> to vector<16x16xf32>
    %43 = tpu.concatenate %41, %42 in 1 : vector<16x16xf32>, vector<16x16xf32> -> vector<16x32xf32>
    %44 = arith.mulf %38, %16 : vector<16x32xf32>
    %45 = arith.mulf %43, %17 : vector<16x32xf32>
    %46 = arith.addf %44, %45 : vector<16x32xf32>
    %cst_15 = arith.constant dense<0.000000e+00> : vector<16x16xf32>
    %47 = tpu.matmul %46, %26, %cst_15 {dimension_numbers = #tpu.dot_dimension_numbers<[1], [1], [0], [0], [0, 0, 1, 0], [], []>} : vector<16x32xf32>, vector<16x32xf32>, vector<16x16xf32> -> vector<16x16xf32>
    %cst_16 = arith.constant 0.0883883461 : f32
    %48 = vector.broadcast %cst_16 : f32 to vector<16x16xf32>
    %49 = arith.mulf %47, %48 : vector<16x16xf32>
    %50 = math.tanh %49 : vector<16x16xf32>
    %cst_17 = arith.constant 3.000000e+01 : f32
    %51 = vector.broadcast %cst_17 : f32 to vector<16x16xf32>
    %52 = arith.mulf %51, %50 : vector<16x16xf32>
    %cst_18 = arith.constant dense<0xFF800000> : vector<16xf32>
    %53 = vector.multi_reduction <maximumf>, %52, %cst_18 [1] : vector<16x16xf32> to vector<16xf32>
    %54 = vector.shape_cast %53 : vector<16xf32> to vector<16x1xf32>
    %55 = vector.broadcast %54 : vector<16x1xf32> to vector<16x16xf32>
    %56 = arith.subf %52, %55 : vector<16x16xf32>
    %57 = math.exp %56 : vector<16x16xf32>
    %cst_19 = arith.constant dense<0.000000e+00> : vector<16xf32>
    %58 = vector.multi_reduction <add>, %57, %cst_19 [1] : vector<16x16xf32> to vector<16xf32>
    %59 = vector.shape_cast %58 : vector<16xf32> to vector<16x1xf32>
    %60 = vector.broadcast %59 : vector<16x1xf32> to vector<16x16xf32>
    %61 = arith.divf %57, %60 : vector<16x16xf32>
    %cst_20 = arith.constant dense<0.000000e+00> : vector<16x32xf32>
    %62 = tpu.matmul %61, %27, %cst_20 {dimension_numbers = #tpu.dot_dimension_numbers<[1], [0], [0], [1], [0, 0, 1, 1], [], []>} : vector<16x16xf32>, vector<16x32xf32>, vector<16x32xf32> -> vector<16x32xf32>
    %63 = vector.extract_strided_slice %15 {offsets = [0, 32], sizes = [16, 32], strides = [1, 1]} : vector<16x256xf32> to vector<16x32xf32>
    %64 = vector.extract_strided_slice %63 {offsets = [0, 16], sizes = [16, 16], strides = [1, 1]} : vector<16x32xf32> to vector<16x16xf32>
    %cst_21 = arith.constant 0.000000e+00 : f32
    %65 = vector.broadcast %cst_21 : f32 to vector<16x16xf32>
    %66 = arith.subf %65, %64 : vector<16x16xf32>
    %67 = vector.extract_strided_slice %63 {offsets = [0, 0], sizes = [16, 16], strides = [1, 1]} : vector<16x32xf32> to vector<16x16xf32>
    %68 = tpu.concatenate %66, %67 in 1 : vector<16x16xf32>, vector<16x16xf32> -> vector<16x32xf32>
    %69 = arith.mulf %63, %16 : vector<16x32xf32>
    %70 = arith.mulf %68, %17 : vector<16x32xf32>
    %71 = arith.addf %69, %70 : vector<16x32xf32>
    %cst_22 = arith.constant dense<0.000000e+00> : vector<16x16xf32>
    %72 = tpu.matmul %71, %26, %cst_22 {dimension_numbers = #tpu.dot_dimension_numbers<[1], [1], [0], [0], [0, 0, 1, 0], [], []>} : vector<16x32xf32>, vector<16x32xf32>, vector<16x16xf32> -> vector<16x16xf32>
    %cst_23 = arith.constant 0.0883883461 : f32
    %73 = vector.broadcast %cst_23 : f32 to vector<16x16xf32>
    %74 = arith.mulf %72, %73 : vector<16x16xf32>
    %75 = math.tanh %74 : vector<16x16xf32>
    %cst_24 = arith.constant 3.000000e+01 : f32
    %76 = vector.broadcast %cst_24 : f32 to vector<16x16xf32>
    %77 = arith.mulf %76, %75 : vector<16x16xf32>
    %cst_25 = arith.constant dense<0xFF800000> : vector<16xf32>
    %78 = vector.multi_reduction <maximumf>, %77, %cst_25 [1] : vector<16x16xf32> to vector<16xf32>
    %79 = vector.shape_cast %78 : vector<16xf32> to vector<16x1xf32>
    %80 = vector.broadcast %79 : vector<16x1xf32> to vector<16x16xf32>
    %81 = arith.subf %77, %80 : vector<16x16xf32>
    %82 = math.exp %81 : vector<16x16xf32>
    %cst_26 = arith.constant dense<0.000000e+00> : vector<16xf32>
    %83 = vector.multi_reduction <add>, %82, %cst_26 [1] : vector<16x16xf32> to vector<16xf32>
    %84 = vector.shape_cast %83 : vector<16xf32> to vector<16x1xf32>
    %85 = vector.broadcast %84 : vector<16x1xf32> to vector<16x16xf32>
    %86 = arith.divf %82, %85 : vector<16x16xf32>
    %cst_27 = arith.constant dense<0.000000e+00> : vector<16x32xf32>
    %87 = tpu.matmul %86, %27, %cst_27 {dimension_numbers = #tpu.dot_dimension_numbers<[1], [0], [0], [1], [0, 0, 1, 1], [], []>} : vector<16x16xf32>, vector<16x32xf32>, vector<16x32xf32> -> vector<16x32xf32>
    %88 = vector.extract_strided_slice %15 {offsets = [0, 64], sizes = [16, 32], strides = [1, 1]} : vector<16x256xf32> to vector<16x32xf32>
    %89 = vector.extract_strided_slice %88 {offsets = [0, 16], sizes = [16, 16], strides = [1, 1]} : vector<16x32xf32> to vector<16x16xf32>
    %cst_28 = arith.constant 0.000000e+00 : f32
    %90 = vector.broadcast %cst_28 : f32 to vector<16x16xf32>
    %91 = arith.subf %90, %89 : vector<16x16xf32>
    %92 = vector.extract_strided_slice %88 {offsets = [0, 0], sizes = [16, 16], strides = [1, 1]} : vector<16x32xf32> to vector<16x16xf32>
    %93 = tpu.concatenate %91, %92 in 1 : vector<16x16xf32>, vector<16x16xf32> -> vector<16x32xf32>
    %94 = arith.mulf %88, %16 : vector<16x32xf32>
    %95 = arith.mulf %93, %17 : vector<16x32xf32>
    %96 = arith.addf %94, %95 : vector<16x32xf32>
    %cst_29 = arith.constant dense<0.000000e+00> : vector<16x16xf32>
    %97 = tpu.matmul %96, %36, %cst_29 {dimension_numbers = #tpu.dot_dimension_numbers<[1], [1], [0], [0], [0, 0, 1, 0], [], []>} : vector<16x32xf32>, vector<16x32xf32>, vector<16x16xf32> -> vector<16x16xf32>
    %cst_30 = arith.constant 0.0883883461 : f32
    %98 = vector.broadcast %cst_30 : f32 to vector<16x16xf32>
    %99 = arith.mulf %97, %98 : vector<16x16xf32>
    %100 = math.tanh %99 : vector<16x16xf32>
    %cst_31 = arith.constant 3.000000e+01 : f32
    %101 = vector.broadcast %cst_31 : f32 to vector<16x16xf32>
    %102 = arith.mulf %101, %100 : vector<16x16xf32>
    %cst_32 = arith.constant dense<0xFF800000> : vector<16xf32>
    %103 = vector.multi_reduction <maximumf>, %102, %cst_32 [1] : vector<16x16xf32> to vector<16xf32>
    %104 = vector.shape_cast %103 : vector<16xf32> to vector<16x1xf32>
    %105 = vector.broadcast %104 : vector<16x1xf32> to vector<16x16xf32>
    %106 = arith.subf %102, %105 : vector<16x16xf32>
    %107 = math.exp %106 : vector<16x16xf32>
    %cst_33 = arith.constant dense<0.000000e+00> : vector<16xf32>
    %108 = vector.multi_reduction <add>, %107, %cst_33 [1] : vector<16x16xf32> to vector<16xf32>
    %109 = vector.shape_cast %108 : vector<16xf32> to vector<16x1xf32>
    %110 = vector.broadcast %109 : vector<16x1xf32> to vector<16x16xf32>
    %111 = arith.divf %107, %110 : vector<16x16xf32>
    %cst_34 = arith.constant dense<0.000000e+00> : vector<16x32xf32>
    %112 = tpu.matmul %111, %37, %cst_34 {dimension_numbers = #tpu.dot_dimension_numbers<[1], [0], [0], [1], [0, 0, 1, 1], [], []>} : vector<16x16xf32>, vector<16x32xf32>, vector<16x32xf32> -> vector<16x32xf32>
    %113 = vector.extract_strided_slice %15 {offsets = [0, 96], sizes = [16, 32], strides = [1, 1]} : vector<16x256xf32> to vector<16x32xf32>
    %114 = vector.extract_strided_slice %113 {offsets = [0, 16], sizes = [16, 16], strides = [1, 1]} : vector<16x32xf32> to vector<16x16xf32>
    %cst_35 = arith.constant 0.000000e+00 : f32
    %115 = vector.broadcast %cst_35 : f32 to vector<16x16xf32>
    %116 = arith.subf %115, %114 : vector<16x16xf32>
    %117 = vector.extract_strided_slice %113 {offsets = [0, 0], sizes = [16, 16], strides = [1, 1]} : vector<16x32xf32> to vector<16x16xf32>
    %118 = tpu.concatenate %116, %117 in 1 : vector<16x16xf32>, vector<16x16xf32> -> vector<16x32xf32>
    %119 = arith.mulf %113, %16 : vector<16x32xf32>
    %120 = arith.mulf %118, %17 : vector<16x32xf32>
    %121 = arith.addf %119, %120 : vector<16x32xf32>
    %cst_36 = arith.constant dense<0.000000e+00> : vector<16x16xf32>
    %122 = tpu.matmul %121, %36, %cst_36 {dimension_numbers = #tpu.dot_dimension_numbers<[1], [1], [0], [0], [0, 0, 1, 0], [], []>} : vector<16x32xf32>, vector<16x32xf32>, vector<16x16xf32> -> vector<16x16xf32>
    %cst_37 = arith.constant 0.0883883461 : f32
    %123 = vector.broadcast %cst_37 : f32 to vector<16x16xf32>
    %124 = arith.mulf %122, %123 : vector<16x16xf32>
    %125 = math.tanh %124 : vector<16x16xf32>
    %cst_38 = arith.constant 3.000000e+01 : f32
    %126 = vector.broadcast %cst_38 : f32 to vector<16x16xf32>
    %127 = arith.mulf %126, %125 : vector<16x16xf32>
    %cst_39 = arith.constant dense<0xFF800000> : vector<16xf32>
    %128 = vector.multi_reduction <maximumf>, %127, %cst_39 [1] : vector<16x16xf32> to vector<16xf32>
    %129 = vector.shape_cast %128 : vector<16xf32> to vector<16x1xf32>
    %130 = vector.broadcast %129 : vector<16x1xf32> to vector<16x16xf32>
    %131 = arith.subf %127, %130 : vector<16x16xf32>
    %132 = math.exp %131 : vector<16x16xf32>
    %cst_40 = arith.constant dense<0.000000e+00> : vector<16xf32>
    %133 = vector.multi_reduction <add>, %132, %cst_40 [1] : vector<16x16xf32> to vector<16xf32>
    %134 = vector.shape_cast %133 : vector<16xf32> to vector<16x1xf32>
    %135 = vector.broadcast %134 : vector<16x1xf32> to vector<16x16xf32>
    %136 = arith.divf %132, %135 : vector<16x16xf32>
    %cst_41 = arith.constant dense<0.000000e+00> : vector<16x32xf32>
    %137 = tpu.matmul %136, %37, %cst_41 {dimension_numbers = #tpu.dot_dimension_numbers<[1], [0], [0], [1], [0, 0, 1, 1], [], []>} : vector<16x16xf32>, vector<16x32xf32>, vector<16x32xf32> -> vector<16x32xf32>
    %138 = tpu.concatenate %62, %87, %112, %137 in 1 : vector<16x32xf32>, vector<16x32xf32>, vector<16x32xf32>, vector<16x32xf32> -> vector<16x128xf32>
    %c0_42 = arith.constant 0 : index
    %c0_43 = arith.constant 0 : index
    %139 = vector.load %arg6[%c0_42, %c0_43] : memref<128x128xf32, #tpu.memory_space<vmem>>, vector<128x128xf32>
    %cst_44 = arith.constant dense<0.000000e+00> : vector<16x128xf32>
    %140 = tpu.matmul %138, %139, %cst_44 {dimension_numbers = #tpu.dot_dimension_numbers<[1], [0], [0], [1], [0, 0, 1, 1], [], []>} : vector<16x128xf32>, vector<128x128xf32>, vector<16x128xf32> -> vector<16x128xf32>
    %c0_45 = arith.constant 0 : index
    %c0_46 = arith.constant 0 : index
    %141 = vector.load %arg7[%c0_45, %c0_46] : memref<1x128xf32, #tpu.memory_space<vmem>>, vector<1x128xf32>
    %142 = arith.mulf %140, %140 : vector<16x128xf32>
    %cst_47 = arith.constant dense<0.000000e+00> : vector<16xf32>
    %143 = vector.multi_reduction <add>, %142, %cst_47 [1] : vector<16x128xf32> to vector<16xf32>
    %144 = vector.shape_cast %143 : vector<16xf32> to vector<16x1xf32>
    %cst_48 = arith.constant 1.280000e+02 : f32
    %145 = vector.broadcast %cst_48 : f32 to vector<16x1xf32>
    %146 = arith.divf %144, %145 : vector<16x1xf32>
    %cst_49 = arith.constant 9.99999974E-6 : f32
    %147 = vector.broadcast %cst_49 : f32 to vector<16x1xf32>
    %148 = arith.addf %146, %147 : vector<16x1xf32>
    %149 = math.rsqrt %148 : vector<16x1xf32>
    %150 = vector.broadcast %149 : vector<16x1xf32> to vector<16x128xf32>
    %151 = arith.mulf %140, %150 : vector<16x128xf32>
    %152 = vector.broadcast %141 : vector<1x128xf32> to vector<16x128xf32>
    %153 = arith.mulf %151, %152 : vector<16x128xf32>
    %154 = arith.addf %0, %153 : vector<16x128xf32>
    %c0_50 = arith.constant 0 : index
    %c0_51 = arith.constant 0 : index
    %155 = vector.load %arg10[%c0_50, %c0_51] : memref<16x128xf32, #tpu.memory_space<vmem>>, vector<16x128xf32>
    tpu.vector_store %arg10[%c0_50, %c0_51], %154 {strides = array<i32>} : memref<16x128xf32, #tpu.memory_space<vmem>>, vector<16x128xf32>,
    %c0_52 = arith.constant 0 : index
    %c0_53 = arith.constant 0 : index
    %156 = vector.load %arg8[%c0_52, %c0_53] : memref<1x128xf32, #tpu.memory_space<vmem>>, vector<1x128xf32>
    %157 = arith.mulf %154, %154 : vector<16x128xf32>
    %cst_54 = arith.constant dense<0.000000e+00> : vector<16xf32>
    %158 = vector.multi_reduction <add>, %157, %cst_54 [1] : vector<16x128xf32> to vector<16xf32>
    %159 = vector.shape_cast %158 : vector<16xf32> to vector<16x1xf32>
    %cst_55 = arith.constant 1.280000e+02 : f32
    %160 = vector.broadcast %cst_55 : f32 to vector<16x1xf32>
    %161 = arith.divf %159, %160 : vector<16x1xf32>
    %cst_56 = arith.constant 9.99999974E-6 : f32
    %162 = vector.broadcast %cst_56 : f32 to vector<16x1xf32>
    %163 = arith.addf %161, %162 : vector<16x1xf32>
    %164 = math.rsqrt %163 : vector<16x1xf32>
    %165 = vector.broadcast %164 : vector<16x1xf32> to vector<16x128xf32>
    %166 = arith.mulf %154, %165 : vector<16x128xf32>
    %167 = vector.broadcast %156 : vector<1x128xf32> to vector<16x128xf32>
    %168 = arith.mulf %166, %167 : vector<16x128xf32>
    %169 = arith.truncf %168 : vector<16x128xf32> to vector<16x128xbf16>
    %c0_57 = arith.constant 0 : index
    %c0_58 = arith.constant 0 : index
    %170 = vector.load %arg11[%c0_57, %c0_58] : memref<16x128xbf16, #tpu.memory_space<vmem>>, vector<16x128xbf16>
    tpu.vector_store %arg11[%c0_57, %c0_58], %169 {strides = array<i32>} : memref<16x128xbf16, #tpu.memory_space<vmem>>, vector<16x128xbf16>,
    %c0_59 = arith.constant 0 : index
    %c0_60 = arith.constant 0 : index
    %171 = vector.load %arg9[%c0_59, %c0_60] : memref<128x4xf32, #tpu.memory_space<vmem>>, vector<128x4xf32>
    %cst_61 = arith.constant dense<0.000000e+00> : vector<16x4xf32>
    %172 = tpu.matmul %168, %171, %cst_61 {dimension_numbers = #tpu.dot_dimension_numbers<[1], [0], [0], [1], [0, 0, 1, 1], [], []>} : vector<16x128xf32>, vector<128x4xf32>, vector<16x4xf32> -> vector<16x4xf32>
    %c0_62 = arith.constant 0 : index
    %c0_63 = arith.constant 0 : index
    %173 = vector.load %arg12[%c0_62, %c0_63] : memref<16x4xf32, #tpu.memory_space<vmem>>, vector<16x4xf32>
    tpu.vector_store %arg12[%c0_62, %c0_63], %172 {strides = array<i32>} : memref<16x4xf32, #tpu.memory_space<vmem>>, vector<16x4xf32>,
    return
  }
  func.func @transform_0(%arg0: i32) -> (i32, i32) {
    %c0_i32 = arith.constant 0 : i32
    %c0_i32_0 = arith.constant 0 : i32
    return %arg0, %c0_i32 : i32, i32
  }
  func.func @transform_1(%arg0: i32) -> (i32, i32) {
    %c0_i32 = arith.constant 0 : i32
    %c0_i32_0 = arith.constant 0 : i32
    %c0_i32_1 = arith.constant 0 : i32
    return %c0_i32, %c0_i32_0 : i32, i32
  }
  func.func @transform_2(%arg0: i32) -> (i32, i32) {
    %c0_i32 = arith.constant 0 : i32
    %c0_i32_0 = arith.constant 0 : i32
    %c0_i32_1 = arith.constant 0 : i32
    return %c0_i32, %c0_i32_0 : i32, i32
  }
  func.func @transform_3(%arg0: i32) -> (i32, i32) {
    %c0_i32 = arith.constant 0 : i32
    %c0_i32_0 = arith.constant 0 : i32
    return %arg0, %c0_i32 : i32, i32
  }
  func.func @transform_4(%arg0: i32) -> (i32, i32) {
    %c0_i32 = arith.constant 0 : i32
    %c0_i32_0 = arith.constant 0 : i32
    return %arg0, %c0_i32 : i32, i32
  }
  func.func @transform_5(%arg0: i32) -> (i32, i32) {
    %c0_i32 = arith.constant 0 : i32
    %c0_i32_0 = arith.constant 0 : i32
    %c0_i32_1 = arith.constant 0 : i32
    return %c0_i32, %c0_i32_0 : i32, i32
  }
  func.func @transform_6(%arg0: i32) -> (i32, i32) {
    %c0_i32 = arith.constant 0 : i32
    %c0_i32_0 = arith.constant 0 : i32
    %c0_i32_1 = arith.constant 0 : i32
    return %c0_i32, %c0_i32_0 : i32, i32
  }
  func.func @transform_7(%arg0: i32) -> (i32, i32) {
    %c0_i32 = arith.constant 0 : i32
    %c0_i32_0 = arith.constant 0 : i32
    %c0_i32_1 = arith.constant 0 : i32
    return %c0_i32, %c0_i32_0 : i32, i32
  }
  func.func @transform_8(%arg0: i32) -> (i32, i32) {
    %c0_i32 = arith.constant 0 : i32
    %c0_i32_0 = arith.constant 0 : i32
    %c0_i32_1 = arith.constant 0 : i32
    return %c0_i32, %c0_i32_0 : i32, i32
  }
  func.func @transform_9(%arg0: i32) -> (i32, i32) {
    %c0_i32 = arith.constant 0 : i32
    %c0_i32_0 = arith.constant 0 : i32
    return %arg0, %c0_i32 : i32, i32
  }
  func.func @transform_10(%arg0: i32) -> (i32, i32) {
    %c0_i32 = arith.constant 0 : i32
    %c0_i32_0 = arith.constant 0 : i32
    return %arg0, %c0_i32 : i32, i32
  }
  func.func @transform_11(%arg0: i32) -> (i32, i32) {
    %c0_i32 = arith.constant 0 : i32
    %c0_i32_0 = arith.constant 0 : i32
    return %arg0, %c0_i32 : i32, i32
  }
}

</mosaic_0001>

<bundles_post_ra>
// kernel: decoder_layer_forward.3
= control target key start
LH: loop header
LB: loop body
LE: loop exit
PB: predicated region body
PF: predicated region fallthrough
CT: control target
= control target key end

     0   :  { %11 = vsyncpa [#allocation4], 0  ;;  %s1497_s21 = smov 0   ;;  %s1782_s0 = inlined_call_operand.vmem [shape: bf16[32,128], index: 0, kind: input, shape index: {}]   ;;  %s1783_s1 = inlined_call_operand.vmem [shape: bf16[4,128,512], index: 1, kind: input, shape index: {}]   ;;  %s1784_s2 = inlined_call_operand.vmem [shape: bf16[4,256,128], index: 2, kind: input, shape index: {}]   ;;  %s1785_s3 = inlined_call_operand.vmem [shape: f32[4,32,1], index: 3, kind: input, shape index: {}]   ;;  %s1786_s4 = inlined_call_operand.vmem [shape: f32[32,128], index: 4, kind: input, shape index: {}]   ;;  %s1787_s5 = inlined_call_operand.vmem [shape: f32[1,128], index: 5, kind: input, shape index: {}]   ;;  %s1788_s6 = inlined_call_operand.hbm [shape: f32[32,128], index: 6, kind: output, shape index: {}]  }
   0x1 LB: > { %s1503_s22 = sadd.s32 4294967295, %s1455_s21   ;;  %p1181_p0 = scmp.ge.s32.totalorder %s1455_s21, 1  ;;  %s1455_s21 = sphi %s1497_s21, %s17_s21  }
   0x2   : > { %p228_p1 = scmp.lt.s32.totalorder %s1455_s21, 5 }
   0x4   : > { %p229_p2 = pnand %p1181_p0, %p228_p1 }
   0x5   : > { %p263_p3 = scmp.lt.s32.totalorder (!%p229_p2), %s1503_s22, 3  ;;  %p1188_p4 = scmp.ne.s32.totalorder (!%p229_p2), %s1503_s22, 0 }
   0x6   : > { %232 = sbr.rel (%p229_p2) target bundleno = 760 (0x2f8), region = 44 }
   0xd   : > { %s264_s23 = scalar_select %p263_p3, %s1503_s22, 3 }
   0xe   : > { %282 = sbr.rel (%p1188_p4) target bundleno = 21 (0x15), region = 48  ;;  %v1457_v0 = vmov (!%p1188_p4), 0.0  }
   0xf   : > { %s1245_s24 = sshll.u32 %s264_s23, 8  ;;  %s1246_s25 = sshll.u32 %s264_s23, 7  ;;  %283 = vst [vmem:[#allocation2] sm:$0xff] (!%p1188_p4), %v1457_v0  ;;  %284 = vst [vmem:[#allocation2 + $0x8] sm:$0xff] (!%p1188_p4), %v1457_v0 }
  0x10   : > { %s1512_s28 = scalar_lea.vmem %s1783_s1, %s1245_s24  ;;  %s1517_s7 = scalar_lea.vmem %s1784_s2, %s1246_s25  ;;  %285 = vst [vmem:[#allocation2 + $0x10] sm:$0xff] (!%p1188_p4), %v1457_v0  ;;  %286 = vst [vmem:[#allocation2 + $0x18] sm:$0xff] (!%p1188_p4), %v1457_v0 }
  0x11   : > { %s1247_s8 = sshll.u32 %s264_s23, 5 }
  0x12   : > { %s1522_s11 = scalar_lea.vmem %s1785_s3, %s1247_s8 }
  0x15 PF: > { %v1313_v1 = vld [vmem:[%s1512_s28 + $0x4] ss:$16 sps:$4 sm:$0xff]   ;;  %v1315_v2 = vld [vmem:[%s1512_s28] ss:$16 sps:$4 sm:$0xff]   ;;  %v1458_v3 = vmov 0   ;;  %v1338_v34 = vld [vmem:[%s1782_s0 + $0x8] sm:$0xff]  }
  0x16   : > { %527 = vmatprep.mubr.bf16.mxu0 %v1458_v3  ;;  %580 = vmatprep.mubr.bf16.mxu1 %v1458_v3  ;;  %v1316_v4 = vld [vmem:[%s1512_s28 + $0x24] ss:$16 sps:$4 sm:$0xff]   ;;  %v1318_v5 = vld [vmem:[%s1512_s28 + $0x20] ss:$16 sps:$4 sm:$0xff]   ;;  %v1339_v11 = vld [vmem:[%s1512_s28 + $0xc] ss:$16 sps:$4 sm:$0xff]  }
  0x17   : > { %495 = vmatprep.subr.bf16.mxu0 %v1313_v1  ;;  %1311 = vset.pattern.permute.xlu0 %v1458_v3  ;;  %v1319_v6 = vld [vmem:[%s1512_s28 + $0x44] ss:$16 sps:$4 sm:$0xff]   ;;  %v1321_v7 = vld [vmem:[%s1512_s28 + $0x40] ss:$16 sps:$4 sm:$0xff]   ;;  %v1341_v12 = vld [vmem:[%s1512_s28 + $0x8] ss:$16 sps:$4 sm:$0xff]  }
  0x18   : > { %496 = vmatpush1.bf16.msra.mxu0 %v1315_v2  ;;  %1312 = vset.pattern.permute.xlu1 %v1458_v3  ;;  %v1322_v8 = vld [vmem:[%s1512_s28 + $0x64] ss:$16 sps:$4 sm:$0xff]   ;;  %v1324_v9 = vld [vmem:[%s1512_s28 + $0x60] ss:$16 sps:$4 sm:$0xff]   ;;  %v1342_v13 = vld [vmem:[%s1512_s28 + $0x2c] ss:$16 sps:$4 sm:$0xff]  }
  0x19   : > { %497 = vmatprep.subr.bf16.mxu0 %v1316_v4  ;;  %v1325_v10 = vld [vmem:[%s1512_s28 + $0x84] ss:$16 sps:$4 sm:$0xff]   ;;  %v1327_v14 = vld [vmem:[%s1512_s28 + $0x80] ss:$16 sps:$4 sm:$0xff]   ;;  %548 = vmatprep.subr.bf16.mxu1 %v1339_v11  ;;  %v1344_v16 = vld [vmem:[%s1512_s28 + $0x28] ss:$16 sps:$4 sm:$0xff]  }
  0x1a   : > { %v1328_v15 = vld [vmem:[%s1512_s28 + $0xa4] ss:$16 sps:$4 sm:$0xff]   ;;  %549 = vmatpush1.bf16.msra.mxu1 %v1341_v12  ;;  %v1345_v17 = vld [vmem:[%s1512_s28 + $0x4c] ss:$16 sps:$4 sm:$0xff]   ;;  %v1330_v18 = vld [vmem:[%s1512_s28 + $0xa0] ss:$16 sps:$4 sm:$0xff]  }
  0x1b   : > { %550 = vmatprep.subr.bf16.mxu1 %v1342_v13  ;;  %v1331_v19 = vld [vmem:[%s1512_s28 + $0xc4] ss:$16 sps:$4 sm:$0xff]   ;;  %v1347_v20 = vld [vmem:[%s1512_s28 + $0x48] ss:$16 sps:$4 sm:$0xff]   ;;  %v1333_v21 = vld [vmem:[%s1512_s28 + $0xc0] ss:$16 sps:$4 sm:$0xff]  }
  0x1c   : > { %498 = vmatpush1.bf16.msra.mxu0 %v1318_v5  ;;  %v1348_v22 = vld [vmem:[%s1512_s28 + $0x6c] ss:$16 sps:$4 sm:$0xff]   ;;  %v1334_v23 = vld [vmem:[%s1512_s28 + $0xe4] ss:$16 sps:$4 sm:$0xff]   ;;  %v1350_v24 = vld [vmem:[%s1512_s28 + $0x68] ss:$16 sps:$4 sm:$0xff]  }
  0x1d   : > { %499 = vmatprep.subr.bf16.mxu0 %v1319_v6  ;;  %v1351_v25 = vld [vmem:[%s1512_s28 + $0x8c] ss:$16 sps:$4 sm:$0xff]   ;;  %v1336_v26 = vld [vmem:[%s1512_s28 + $0xe0] ss:$16 sps:$4 sm:$0xff]   ;;  %v1353_v27 = vld [vmem:[%s1512_s28 + $0x88] ss:$16 sps:$4 sm:$0xff]  }
  0x1e   : > { %551 = vmatpush1.bf16.msra.mxu1 %v1344_v16  ;;  %v1354_v28 = vld [vmem:[%s1512_s28 + $0xac] ss:$16 sps:$4 sm:$0xff]   ;;  %v1337_v29 = vld [vmem:[%s1782_s0] sm:$0xff]   ;;  %v1356_v30 = vld [vmem:[%s1512_s28 + $0xa8] ss:$16 sps:$4 sm:$0xff]   ;;  %p1239_p5 = scmp.ne.s32.totalorder %s1503_s22, 3 }
  0x1f   : > { %552 = vmatprep.subr.bf16.mxu1 %v1345_v17  ;;  %v1357_v31 = vld [vmem:[%s1512_s28 + $0xcc] ss:$16 sps:$4 sm:$0xff]   ;;  %v1359_v32 = vld [vmem:[%s1512_s28 + $0xc8] ss:$16 sps:$4 sm:$0xff]   ;;  %v1363_v36 = vld [vmem:[%s1517_s7 + $0x40] sm:$0xff]  }
  0x20   : > { %500 = vmatpush1.bf16.msra.mxu0 %v1321_v7  ;;  %v1360_v33 = vld [vmem:[%s1512_s28 + $0xec] ss:$16 sps:$4 sm:$0xff]   ;;  %v1362_v35 = vld [vmem:[%s1512_s28 + $0xe8] ss:$16 sps:$4 sm:$0xff]   ;;  %v1364_v37 = vld [vmem:[%s1517_s7] sm:$0xff]  }
  0x21   : > { %501 = vmatprep.subr.bf16.mxu0 %v1322_v8  ;;  %v1365_v38 = vld [vmem:[%s1517_s7 + $0x48] sm:$0xff]   ;;  %v1367_v40 = vld [vmem:[%s1517_s7 + $0x50] sm:$0xff]   ;;  %v1369_v42 = vld [vmem:[%s1517_s7 + $0x58] sm:$0xff]  }
  0x22   : > { %553 = vmatpush1.bf16.msra.mxu1 %v1347_v20  ;;  %v1366_v39 = vld [vmem:[%s1517_s7 + $0x8] sm:$0xff]   ;;  %v1368_v41 = vld [vmem:[%s1517_s7 + $0x10] sm:$0xff]   ;;  %v1370_v43 = vld [vmem:[%s1517_s7 + $0x18] sm:$0xff]  }
  0x23   : > { %554 = vmatprep.subr.bf16.mxu1 %v1348_v22  ;;  %v1371_v44 = vld [vmem:[%s1517_s7 + $0x60] sm:$0xff]   ;;  %v1373_v46 = vld [vmem:[%s1517_s7 + $0x68] sm:$0xff]   ;;  %v1375_v48 = vld [vmem:[%s1517_s7 + $0x70] sm:$0xff]  }
  0x24   : > { %502 = vmatpush1.bf16.msra.mxu0 %v1324_v9  ;;  %v1372_v45 = vld [vmem:[%s1517_s7 + $0x20] sm:$0xff]   ;;  %v1374_v47 = vld [vmem:[%s1517_s7 + $0x28] sm:$0xff]   ;;  %v1376_v49 = vld [vmem:[%s1517_s7 + $0x30] sm:$0xff]  }
  0x25   : > { %503 = vmatprep.subr.bf16.mxu0 %v1325_v10  ;;  %v1377_v50 = vld [vmem:[%s1517_s7 + $0x78] sm:$0xff]   ;;  %v1010_v52 = vld [vmem:[%s1522_s11] sm:$0xff]  ;;  %v1012_v53 = vld [vmem:[%s1522_s11 + $0x10] sm:$0xff] }
  0x26   : > { %555 = vmatpush1.bf16.msra.mxu1 %v1350_v24  ;;  %v1378_v51 = vld [vmem:[%s1517_s7 + $0x38] sm:$0xff]   ;;  %1016 = vperm.xlu0 %1311, %v1010_v52   ;;  %v1011_v54 = vld [vmem:[%s1522_s11 + $0x8] sm:$0xff] }
  0x27   : > { %556 = vmatprep.subr.bf16.mxu1 %v1351_v25  ;;  %1026 = vperm.xlu1 %1312, %v1012_v53   ;;  %v1013_v55 = vld [vmem:[%s1522_s11 + $0x18] sm:$0xff] }
  0x28   : > { %504 = vmatpush1.bf16.msra.mxu0 %v1327_v14 }
  0x29   : > { %505 = vmatprep.subr.bf16.mxu0 %v1328_v15 }
  0x2a   : > { %557 = vmatpush1.bf16.msra.mxu1 %v1353_v27  ;;  %1021 = vperm.xlu0 %1311, %v1011_v54  }
  0x2b   : > { %558 = vmatprep.subr.bf16.mxu1 %v1354_v28  ;;  %1031 = vperm.xlu1 %1312, %v1013_v55  }
  0x2c   : > { %506 = vmatpush1.bf16.msra.mxu0 %v1330_v18 }
  0x2d   : > { %507 = vmatprep.subr.bf16.mxu0 %v1331_v19 }
  0x2e   : > { %559 = vmatpush1.bf16.msra.mxu1 %v1356_v30 }
  0x2f   : > { %560 = vmatprep.subr.bf16.mxu1 %v1357_v31 }
  0x30   : > { %508 = vmatpush1.bf16.msra.mxu0 %v1333_v21 }
  0x31   : > { %509 = vmatprep.subr.bf16.mxu0 %v1334_v23 }
  0x32   : > { %561 = vmatpush1.bf16.msra.mxu1 %v1359_v32 }
  0x33   : > { %562 = vmatprep.subr.bf16.mxu1 %v1360_v33 }
  0x34   : > { %510 = vmatpush1.bf16.msra.mxu0 %v1336_v26 }
  0x35   : > { %1248 = vmatprep.subr.bf16.mxu0 %v1363_v36 }
  0x36   : > { %563 = vmatpush1.bf16.msra.mxu1 %v1362_v35 }
  0x37   : > { %528 = vmatmul.mubr.bf16.vlgmr.msra.gmra.mrb[0].mxu0 %v1337_v29  ;;  %1276 = vmatprep.subr.bf16.mxu1 %v1363_v36 }
  0x38   : > { %537 = vmatprep.mubr.bf16.mxu0 %v1458_v3  ;;  %1249 = vmatpush3.bf16.msra.mxu0 %v1364_v37 }
  0x39   : > { %581 = vmatmul.mubr.bf16.vlgmr.msra.gmra.mrb[0].mxu1 %v1337_v29  ;;  %1250 = vmatprep.subr.bf16.mxu0 %v1365_v38 }
  0x3a   : > { %590 = vmatprep.mubr.bf16.mxu1 %v1458_v3  ;;  %1284 = vmatpush3.bf16.msra.mxu1 %v1364_v37 }
  0x3b   : > { %1277 = vmatprep.subr.bf16.mxu1 %v1365_v38 }
  0x3c   : > { %1251 = vmatpush3.bf16.msra.mxu0 %v1366_v39 }
  0x3d   : > { %1252 = vmatprep.subr.bf16.mxu0 %v1367_v40 }
  0x3e   : > { %1285 = vmatpush3.bf16.msra.mxu1 %v1366_v39 }
  0x3f   : > { %538 = vmatmul.mubr.bf16.gmra.mrb[4].mxu0 %v1338_v34  ;;  %1278 = vmatprep.subr.bf16.mxu1 %v1367_v40 }
  0x40   : > { %1253 = vmatpush3.bf16.msra.mxu0 %v1368_v41 }
  0x41   : > { %591 = vmatmul.mubr.bf16.gmra.mrb[4].mxu1 %v1338_v34  ;;  %1254 = vmatprep.subr.bf16.mxu0 %v1369_v42 }
  0x42   : > { %1286 = vmatpush3.bf16.msra.mxu1 %v1368_v41 }
  0x43   : > { %1279 = vmatprep.subr.bf16.mxu1 %v1369_v42 }
  0x44   : > { %1255 = vmatpush3.bf16.msra.mxu0 %v1370_v43 }
  0x45   : > { %1256 = vmatprep.subr.bf16.mxu0 %v1371_v44 }
  0x46   : > { %1287 = vmatpush3.bf16.msra.mxu1 %v1370_v43 }
  0x47   : > { %1280 = vmatprep.subr.bf16.mxu1 %v1371_v44 }
  0x48   : > { %1257 = vmatpush3.bf16.msra.mxu0 %v1372_v45 }
  0x49   : > { %1258 = vmatprep.subr.bf16.mxu0 %v1373_v46 }
  0x4a   : > { %1288 = vmatpush3.bf16.msra.mxu1 %v1372_v45 }
  0x4b   : > { %1281 = vmatprep.subr.bf16.mxu1 %v1373_v46 }
  0x4c   : > { %1259 = vmatpush3.bf16.msra.mxu0 %v1374_v47 }
  0x4d   : > { %1260 = vmatprep.subr.bf16.mxu0 %v1375_v48 }
  0x4e   : > { %1289 = vmatpush3.bf16.msra.mxu1 %v1374_v47 }
  0x4f   : > { %1282 = vmatprep.subr.bf16.mxu1 %v1375_v48 }
  0x50   : > { %1261 = vmatpush3.bf16.msra.mxu0 %v1376_v49 }
  0x51   : > { %1262 = vmatprep.subr.bf16.mxu0 %v1377_v50 }
  0x52   : > { %1290 = vmatpush3.bf16.msra.mxu1 %v1376_v49 }
  0x53   : > { %1283 = vmatprep.subr.bf16.mxu1 %v1377_v50 }
  0x54   : > { %1263 = vmatpush3.bf16.msra.mxu0 %v1378_v51 }
  0x56   : > { %1291 = vmatpush3.bf16.msra.mxu1 %v1378_v51 }
 0x10a   : > { %v529_v56 = vpop.f32.mrb[0].mxu0 }
 0x10b   : > { %v1589_v57 = vmul.f32 0.70710677, %v529_v56  ;;  %v531_v58 = vpop.f32.mrb[1].mxu0  ;;  %v1626_v29 = vmul.f32 0.5, %v529_v56 }
 0x10c   : > { %v1591_v59 = vmul.f32 0.70710677, %v531_v58  ;;  %v533_v60 = vpop.f32.mrb[2].mxu0  ;;  %v1616_v21 = vpop.f32.mrb[0].mxu1  ;;  %v1628_v31 = vmul.f32 0.5, %v531_v58 }
 0x10d   : > { %v609_v61 = vand.u32 2147483647, %v1589_v57  ;;  %v1594_v62 = vmul.f32 0.70710677, %v533_v60  ;;  %v535_v0 = vpop.f32.mrb[3].mxu0  ;;  %v1619_v24 = vpop.f32.mrb[1].mxu1 }
 0x10e   : > { %v610_v63 = vand.u32 2147483647, %v1591_v59  ;;  %v1598_v4 = vmul.f32 0.70710677, %v535_v0  ;;  %v1624_v28 = vpop.f32.mrb[2].mxu1  ;;  %v1632_v34 = vmul.f32 0.5, %v533_v60 }
 0x10f   : > { %v617_v1 = vmul.f32 0.3275911, %v609_v61  ;;  %v611_v2 = vand.u32 2147483647, %v1594_v62  ;;  %v721_v12 = vsub.f32 0.0, %v609_v61  ;;  %v1630_v33 = vpop.f32.mrb[3].mxu1 }
 0x110   : > { %v618_v3 = vmul.f32 0.3275911, %v610_v63  ;;  %v612_v8 = vand.u32 2147483647, %v1598_v4  ;;  %v722_v17 = vsub.f32 0.0, %v610_v63  ;;  %v1640_v44 = vmul.f32 0.5, %v535_v0 }
 0x111   : > { %v625_v5 = vadd.f32 1.0, %v617_v1  ;;  %v619_v6 = vmul.f32 0.3275911, %v611_v2  ;;  %v729_v22 = vmul.f32 %v721_v12, %v609_v61  ;;  %v723_v25 = vsub.f32 0.0, %v611_v2 }
 0x112   : > { %v626_v7 = vadd.f32 1.0, %v618_v3  ;;  %v1601_v9 = vpop.f32.mrb[4].mxu0  ;;  %v620_v13 = vmul.f32 0.3275911, %v612_v8  ;;  %v730_v30 = vmul.f32 %v722_v17, %v610_v63  ;;  %v724_v35 = vsub.f32 0.0, %v612_v8 }
 0x113   : > { %1379 = vrcp.f32 %v625_v5  ;;  %v627_v10 = vadd.f32 1.0, %v619_v6  ;;  %v1603_v11 = vpop.f32.mrb[5].mxu0  ;;  %v1608_v15 = vmul.f32 0.70710677, %v1601_v9  ;;  %v737_v38 = vmul.f32 1.442695, %v729_v22 }
 0x114   : > { %1381 = vrcp.f32 %v626_v7  ;;  %v1605_v14 = vpop.f32.mrb[6].mxu0  ;;  %v628_v18 = vadd.f32 1.0, %v620_v13  ;;  %v1613_v19 = vmul.f32 0.70710677, %v1603_v11  ;;  %v731_v43 = vmul.f32 %v723_v25, %v611_v2  ;;  %v1646_v54 = vpop.f32.mrb[4].mxu1 }
 0x115   : > { %v1610_v16 = vpop.f32.mrb[7].mxu0  ;;  %1383 = vrcp.f32 %v627_v10  ;;  %v613_v20 = vand.u32 2147483647, %v1608_v15  ;;  %v1622_v27 = vmul.f32 0.70710677, %v1605_v14  ;;  %v732_v50 = vmul.f32 %v724_v35, %v612_v8  ;;  %v1649_v60 = vpop.f32.mrb[5].mxu1 }
 0x116   : > { %v614_v23 = vand.u32 2147483647, %v1613_v19  ;;  %1385 = vrcp.f32 %v628_v18  ;;  %v1636_v41 = vmul.f32 0.70710677, %v1610_v16  ;;  %v739_v47 = vmul.f32 1.442695, %v730_v30 }
 0x117   : > { %v621_v26 = vmul.f32 0.3275911, %v613_v20  ;;  %v615_v37 = vand.u32 2147483647, %v1622_v27  ;;  %v725_v39 = vsub.f32 0.0, %v613_v20  ;;  %v1653_v2 = vpop.f32.mrb[6].mxu1 }
 0x118   : > { %v622_v32 = vmul.f32 0.3275911, %v614_v23  ;;  %v726_v48 = vsub.f32 0.0, %v614_v23  ;;  %v616_v49 = vand.u32 2147483647, %v1636_v41  ;;  %v1656_v8 = vpop.f32.mrb[7].mxu1 }
 0x119   : > { %v629_v36 = vadd.f32 1.0, %v621_v26  ;;  %v623_v45 = vmul.f32 0.3275911, %v615_v37  ;;  %v727_v52 = vsub.f32 0.0, %v615_v37  ;;  %v733_v55 = vmul.f32 %v725_v39, %v613_v20 }
 0x11a   : > { %v630_v40 = vadd.f32 1.0, %v622_v32  ;;  %v624_v56 = vmul.f32 0.3275911, %v616_v49  ;;  %v741_v63 = vmul.f32 1.442695, %v731_v43  ;;  %v728_v0 = vsub.f32 0.0, %v616_v49 }
 0x11b   : > { %1387 = vrcp.f32 %v629_v36  ;;  %v631_v51 = vadd.f32 1.0, %v623_v45  ;;  %v734_v3 = vmul.f32 %v726_v48, %v614_v23  ;;  %v743_v12 = vmul.f32 1.442695, %v732_v50 }
 0x11c   : > { %1389 = vrcp.f32 %v630_v40  ;;  %v632_v5 = vadd.f32 1.0, %v624_v56  ;;  %v1661_v13 = vmul.f32 0.5, %v1601_v9  ;;  %v735_v17 = vmul.f32 %v727_v52, %v615_v37 }
 0x11d   : > { %v1638_v42 = vpop.eup %1379  ;;  %1391 = vpow2.f32 %v737_v38  ;;  %v745_v20 = vmul.f32 1.442695, %v733_v55  ;;  %v736_v25 = vmul.f32 %v728_v0, %v616_v49  ;;  %v747_v32 = vmul.f32 1.442695, %v734_v3 }
 0x11e   : > { %v1642_v46 = vpop.eup %1381  ;;  %v649_v53 = vmul.f32 1.0614054, %v1638_v42  ;;  %1393 = vrcp.f32 %v631_v51  ;;  %v749_v37 = vmul.f32 1.442695, %v735_v17  ;;  %vm769_vm0 = vcmp.ge.f32.partialorder %v1589_v57, 0.0 }
 0x11f   : > { %v650_v58 = vmul.f32 1.0614054, %v1642_v46  ;;  %v1651_v61 = vpop.eup %1383  ;;  %1395 = vrcp.f32 %v632_v5  ;;  %v751_v48 = vmul.f32 1.442695, %v736_v25  ;;  %vm770_vm1 = vcmp.ge.f32.partialorder %v1591_v59, 0.0 }
 0x120   : > { %v657_v1 = vadd.f32 -1.4531521, %v649_v53  ;;  %v651_v7 = vmul.f32 1.0614054, %v1651_v61  ;;  %v1658_v10 = vpop.eup %1385  ;;  %1397 = vpow2.f32 %v739_v47  ;;  %vm771_vm2 = vcmp.ge.f32.partialorder %v1594_v62, 0.0 }
 0x121   : > { %v658_v6 = vadd.f32 -1.4531521, %v650_v58  ;;  %v652_v30 = vmul.f32 1.0614054, %v1658_v10  ;;  %1399 = vpow2.f32 %v741_v63  ;;  %vm772_vm3 = vcmp.ge.f32.partialorder %v1598_v4, 0.0 }
 0x122   : > { %v665_v18 = vmul.f32 %v1638_v42, %v657_v1  ;;  %v659_v23 = vadd.f32 -1.4531521, %v651_v7  ;;  %1401 = vpow2.f32 %v743_v12  ;;  %vm773_vm4 = vcmp.ge.f32.partialorder %v1608_v15, 0.0 }
 0x123   : > { %v666_v22 = vmul.f32 %v1642_v46, %v658_v6  ;;  %v660_v39 = vadd.f32 -1.4531521, %v652_v30  ;;  %1403 = vpow2.f32 %v745_v20  ;;  %vm774_vm5 = vcmp.ge.f32.partialorder %v1613_v19, 0.0 }
 0x124   : > { %v673_v26 = vadd.f32 1.4214138, %v665_v18  ;;  %v667_v36 = vmul.f32 %v1651_v61, %v659_v23  ;;  %1405 = vpow2.f32 %v747_v32  ;;  %vm775_vm6 = vcmp.ge.f32.partialorder %v1622_v27, 0.0 }
 0x125   : > { %v674_v35 = vadd.f32 1.4214138, %v666_v22  ;;  %v1667_v9 = vpop.eup %1387  ;;  %v668_v50 = vmul.f32 %v1658_v10, %v660_v39  ;;  %1407 = vpow2.f32 %v749_v37  ;;  %vm776_vm7 = vcmp.ge.f32.partialorder %v1636_v41, 0.0 }
 0x126   : > { %v681_v38 = vmul.f32 %v1638_v42, %v673_v26  ;;  %v1670_v40 = vpop.eup %1389  ;;  %v675_v45 = vadd.f32 1.4214138, %v667_v36  ;;  %v653_v47 = vmul.f32 1.0614054, %v1667_v9  ;;  %1409 = vpow2.f32 %v751_v48 }
 0x127   : > { %v682_v43 = vmul.f32 %v1642_v46, %v674_v35  ;;  %v654_v51 = vmul.f32 1.0614054, %v1670_v40  ;;  %v1392_v52 = vpop.eup %1391  ;;  %v676_v0 = vadd.f32 1.4214138, %v668_v50 }
 0x128   : > { %v689_v49 = vadd.f32 -0.28449672, %v681_v38  ;;  %v683_v55 = vmul.f32 %v1651_v61, %v675_v45  ;;  %v661_v56 = vadd.f32 -1.4531521, %v653_v47  ;;  %v1677_v58 = vpop.eup %1393 }
 0x129   : > { %v690_v53 = vadd.f32 -0.28449672, %v682_v43  ;;  %v662_v1 = vadd.f32 -1.4531521, %v654_v51  ;;  %v655_v7 = vmul.f32 1.0614054, %v1677_v58  ;;  %v684_v17 = vmul.f32 %v1658_v10, %v676_v0  ;;  %v1685_v20 = vpop.eup %1395 }
 0x12a   : > { %v697_v63 = vmul.f32 %v1638_v42, %v689_v49  ;;  %v691_v5 = vadd.f32 -0.28449672, %v683_v55  ;;  %v669_v6 = vmul.f32 %v1667_v9, %v661_v56  ;;  %v1398_v30 = vpop.eup %1397  ;;  %v656_v37 = vmul.f32 1.0614054, %v1685_v20 }
 0x12b   : > { %v698_v3 = vmul.f32 %v1642_v46, %v690_v53  ;;  %v670_v18 = vmul.f32 %v1670_v40, %v662_v1  ;;  %v663_v26 = vadd.f32 -1.4531521, %v655_v7  ;;  %v692_v35 = vadd.f32 -0.28449672, %v684_v17  ;;  %v1400_v38 = vpop.eup %1399 }
 0x12c   : > { %v705_v12 = vadd.f32 0.2548296, %v697_v63  ;;  %v699_v23 = vmul.f32 %v1651_v61, %v691_v5  ;;  %v677_v25 = vadd.f32 1.4214138, %v669_v6  ;;  %v1402_v48 = vpop.eup %1401  ;;  %v664_v51 = vadd.f32 -1.4531521, %v656_v37 }
 0x12d   : > { %v706_v22 = vadd.f32 0.2548296, %v698_v3  ;;  %v678_v36 = vadd.f32 1.4214138, %v670_v18  ;;  %v671_v47 = vmul.f32 %v1677_v58, %v663_v26  ;;  %v700_v50 = vmul.f32 %v1658_v10, %v692_v35  ;;  %v1404_v53 = vpop.eup %1403 }
 0x12e   : > { %v713_v32 = vmul.f32 %v1638_v42, %v705_v12  ;;  %v707_v43 = vadd.f32 0.2548296, %v699_v23  ;;  %v685_v45 = vmul.f32 %v1667_v9, %v677_v25  ;;  %v672_v5 = vmul.f32 %v1685_v20, %v664_v51  ;;  %v1406_v6 = vpop.eup %1405 }
 0x12f   : > { %v714_v39 = vmul.f32 %v1642_v46, %v706_v22  ;;  %v686_v42 = vmul.f32 %v1670_v40, %v678_v36  ;;  %v679_v46 = vadd.f32 1.4214138, %v671_v47  ;;  %v708_v1 = vadd.f32 0.2548296, %v700_v50  ;;  %v1408_v18 = vpop.eup %1407 }
 0x130   : > { %v753_v49 = vmul.f32 %v1392_v52, %v713_v32  ;;  %v715_v56 = vmul.f32 %v1651_v61, %v707_v43  ;;  %v693_v63 = vadd.f32 -0.28449672, %v685_v45  ;;  %v680_v25 = vadd.f32 1.4214138, %v672_v5  ;;  %v1410_v36 = vpop.eup %1409 }
 0x131   : > { %v754_v55 = vmul.f32 %v1398_v30, %v714_v39  ;;  %v694_v3 = vadd.f32 -0.28449672, %v686_v42  ;;  %v687_v17 = vmul.f32 %v1677_v58, %v679_v46  ;;  %v716_v61 = vmul.f32 %v1658_v10, %v708_v1 }
 0x132   : > { %v761_v0 = vsub.f32 1.0, %v753_v49  ;;  %v755_v7 = vmul.f32 %v1400_v38, %v715_v56  ;;  %v701_v12 = vmul.f32 %v1667_v9, %v693_v63  ;;  %v688_v43 = vmul.f32 %v1685_v20, %v680_v25 }
 0x133   : > { %v762_v52 = vsub.f32 1.0, %v754_v55  ;;  %v702_v23 = vmul.f32 %v1670_v40, %v694_v3  ;;  %v695_v35 = vadd.f32 -0.28449672, %v687_v17  ;;  %v756_v38 = vmul.f32 %v1402_v48, %v716_v61 }
 0x134   : > { %v777_v22 = vsub.f32 0.0, %v761_v0  ;;  %v763_v30 = vsub.f32 1.0, %v755_v7  ;;  %v709_v32 = vadd.f32 0.2548296, %v701_v12  ;;  %v696_v63 = vadd.f32 -0.28449672, %v688_v43 }
 0x135   : > { %v778_v26 = vsub.f32 0.0, %v762_v52  ;;  %v710_v39 = vadd.f32 0.2548296, %v702_v23  ;;  %v764_v42 = vsub.f32 1.0, %v756_v38  ;;  %v703_v55 = vmul.f32 %v1677_v58, %v695_v35 }
 0x136   : > { %v785_v37 = vsel %vm769_vm0, %v761_v0, %v777_v22  ;;  %v779_v10 = vsub.f32 0.0, %v763_v30  ;;  %v717_v49 = vmul.f32 %v1667_v9, %v709_v32  ;;  %v798_v61 = vmul.f32 0.5, %v1603_v11 }
 0x137   : > { %v801_v45 = vadd.f32 1.0, %v785_v37  ;;  %v786_v47 = vsel %vm770_vm1, %v762_v52, %v778_v26  ;;  %v718_v51 = vmul.f32 %v1670_v40, %v710_v39  ;;  %v780_v0 = vsub.f32 0.0, %v764_v42 }
 0x138   : > { %v802_v50 = vadd.f32 1.0, %v786_v47  ;;  %v787_v48 = vsel %vm771_vm2, %v763_v30, %v779_v10  ;;  %v757_v56 = vmul.f32 %v1404_v53, %v717_v49  ;;  %v711_v5 = vadd.f32 0.2548296, %v703_v55  ;;  %v1017_v49 = vpop.permute.xlu0 %1016 }
 0x139   : > { %v809_v57 = vmul.f32 %v801_v45, %v1626_v29  ;;  %v803_v59 = vadd.f32 1.0, %v787_v48  ;;  %v758_v1 = vmul.f32 %v1406_v6, %v718_v51  ;;  %v704_v40 = vmul.f32 %v1685_v20, %v696_v63  ;;  %v1006_v51 = vld [vmem:[#allocation2] sm:$0xff] }
 0x13a   : > { %v810_v46 = vmul.f32 %v802_v50, %v1628_v31  ;;  %v765_v3 = vsub.f32 1.0, %v757_v56  ;;  %v788_v62 = vsel %vm772_vm3, %v764_v42, %v780_v0  ;;  %v719_v31 = vmul.f32 %v1677_v58, %v711_v5  ;;  %v1007_v56 = vld [vmem:[#allocation2 + $0x8] sm:$0xff] }
 0x13b   : > { %v817_v9 = vmul.f32 %v809_v57, %v1616_v21  ;;  %v811_v29 = vmul.f32 %v803_v59, %v1632_v34  ;;  %v766_v53 = vsub.f32 1.0, %v758_v1  ;;  %v804_v7 = vadd.f32 1.0, %v788_v62  ;;  %v1027_v59 = vpop.permute.xlu1 %1026  ;;  %v1009_v62 = vld [vmem:[#allocation2 + $0x18] sm:$0xff] }
 0x13c   : > { %v818_v52 = vmul.f32 %v810_v46, %v1619_v24  ;;  %v781_v12 = vsub.f32 0.0, %v765_v3  ;;  %v712_v17 = vadd.f32 0.2548296, %v704_v40  ;;  %v759_v34 = vmul.f32 %v1408_v18, %v719_v31  ;;  %v1022_v57 = vpop.permute.xlu0 %1021 }
 0x13d   : > { %v819_v21 = vmul.f32 %v811_v29, %v1624_v28  ;;  %v782_v6 = vsub.f32 0.0, %v766_v53  ;;  %v812_v24 = vmul.f32 %v804_v7, %v1640_v44  ;;  %v800_v39 = vmul.f32 0.5, %v1610_v16 }
 0x13e   : > { %v789_v22 = vsel %vm773_vm4, %v765_v3, %v781_v12  ;;  %v720_v4 = vmul.f32 %v1685_v20, %v712_v17  ;;  %v767_v15 = vsub.f32 1.0, %v759_v34  ;;  %v1008_v3 = vld [vmem:[#allocation2 + $0x10] sm:$0xff] }
 0x13f   : > { %v825_v23 = vpack.c.bf16 %v819_v21, %v817_v9  ;;  %v805_v25 = vadd.f32 1.0, %v789_v22  ;;  %v790_v26 = vsel %vm774_vm5, %v766_v53, %v782_v6  ;;  %v820_v58 = vmul.f32 %v812_v24, %v1630_v33  ;;  %v1032_v29 = vpop.permute.xlu1 %1031 }
 0x140   : > { %v806_v30 = vadd.f32 1.0, %v790_v26  ;;  %v760_v32 = vmul.f32 %v1410_v36, %v720_v4  ;;  %v783_v37 = vsub.f32 0.0, %v767_v15  ;;  %v799_v33 = vmul.f32 0.5, %v1605_v14 }
 0x141   : > { %v813_v19 = vmul.f32 %v805_v25, %v1661_v13  ;;  %v826_v28 = vpack.c.bf16 %v820_v58, %v818_v52 }
 0x142   : > { %v814_v35 = vmul.f32 %v806_v30, %v798_v61  ;;  %v768_v44 = vsub.f32 1.0, %v760_v32  ;;  %v791_v18 = vsel %vm775_vm6, %v767_v15, %v783_v37 }
 0x143   : > { %v821_v20 = vmul.f32 %v813_v19, %v1646_v54  ;;  %989 = vmatprep.mubr.bf16.mxu0 %v826_v28  ;;  %v807_v36 = vadd.f32 1.0, %v791_v18 }
 0x144   : > { %v822_v11 = vmul.f32 %v814_v35, %v1649_v60  ;;  %v784_v38 = vsub.f32 0.0, %v768_v44  ;;  %990 = vmatmul.mubr.bf16.vlgmr.msra.gmra.mrb[8].mxu0 %v825_v23 }
 0x145   : > { %v815_v43 = vmul.f32 %v807_v36, %v799_v33 }
 0x146   : > { %v792_v13 = vsel %vm776_vm7, %v768_v44, %v784_v38  ;;  %v1096_v38 = vld [vmem:[%s1786_s4 + $0x10] sm:$0xff] (!%p1239_p5) }
 0x147   : > { %v808_v45 = vadd.f32 1.0, %v792_v13  ;;  %v823_v27 = vmul.f32 %v815_v43, %v1653_v2  ;;  %v1094_v13 = vld [vmem:[%s1786_s4] sm:$0xff] (!%p1239_p5) }
 0x149   : > { %v816_v47 = vmul.f32 %v808_v45, %v800_v39  ;;  %v827_v54 = vpack.c.bf16 %v823_v27, %v821_v20  ;;  %v1240_v20 = vld [vmem:[%s1787_s5] ss:$0 sm:$0xff] (!%p1239_p5) }
 0x14b   : > { %v824_v60 = vmul.f32 %v816_v47, %v1656_v8 }
 0x14d   : > { %v828_v10 = vpack.c.bf16 %v824_v60, %v822_v11  ;;  %v1097_v60 = vld [vmem:[%s1786_s4 + $0x18] sm:$0xff] (!%p1239_p5) }
 0x14f   : > { %997 = vmatprep.mubr.bf16.mxu1 %v828_v10 }
 0x150   : > { %998 = vmatmul.mubr.bf16.vlgmr.msra.gmra.mrb[8].mxu1 %v827_v54 }
 0x217   : > { %v1264_v14 = vpop.f32.mrb[8].mxu0 }
 0x218   : > { %v1265_v50 = vpop.f32.mrb[9].mxu0 }
 0x219   : > { %v1266_v41 = vadd.f32 %v1265_v50, %v1264_v14  ;;  %v1267_v42 = vpop.f32.mrb[10].mxu0  ;;  %v1095_v14 = vld [vmem:[%s1786_s4 + $0x8] sm:$0xff] (!%p1239_p5) }
 0x21a   : > { %v1268_v55 = vpop.f32.mrb[11].mxu0 }
 0x21b   : > { %v1034_v16 = vmul.f32 %v1266_v41, %v1017_v49  ;;  %v1269_v48 = vadd.f32 %v1268_v55, %v1267_v42 }
 0x21d   : > { %v1038_v63 = vadd.f32 %v1034_v16, %v1006_v51  ;;  %v1035_v2 = vmul.f32 %v1269_v48, %v1022_v57 }
 0x21f   : > { %1042 = vst [vmem:[#allocation2] sm:$0xff] %v1038_v63  ;;  %v1039_v46 = vadd.f32 %v1035_v2, %v1007_v56 }
 0x221   : > { %1043 = vst [vmem:[#allocation2 + $0x8] sm:$0xff] %v1039_v46 }
 0x223   : > { %v1270_v8 = vpop.f32.mrb[8].mxu1 }
 0x224   : > { %v1271_v0 = vpop.f32.mrb[9].mxu1 }
 0x225   : > { %v1272_v1 = vadd.f32 %v1271_v0, %v1270_v8  ;;  %v1273_v9 = vpop.f32.mrb[10].mxu1 }
 0x226   : > { %v1274_v5 = vpop.f32.mrb[11].mxu1  ;;  %v1050_v17 = vld [vmem:[#allocation2] sm:$0xff] (!%p1239_p5) }
 0x227   : > { %v1036_v40 = vmul.f32 %v1272_v1, %v1027_v59  ;;  %v1275_v52 = vadd.f32 %v1274_v5, %v1273_v9  ;;  %1049 = sbr.rel (%p1239_p5) target bundleno = 734 (0x2de), region = 52  ;;  %v1055_v24 = vmul.f32 (!%p1239_p5), %v1050_v17, %v1050_v17 }
 0x228   : > { %v1051_v22 = vld [vmem:[#allocation2 + $0x8] sm:$0xff] (!%p1239_p5) }
 0x229   : > { %v1040_v53 = vadd.f32 %v1036_v40, %v1008_v3  ;;  %v1037_v7 = vmul.f32 %v1275_v52, %v1032_v29  ;;  %1059 = vadd.xlane.f32.xlu0 (!%p1239_p5), %v1055_v24  ;;  %v1056_v4 = vmul.f32 (!%p1239_p5), %v1051_v22, %v1051_v22 }
 0x22b   : > { %1044 = vst [vmem:[#allocation2 + $0x10] sm:$0xff] %v1040_v53  ;;  %v1041_v12 = vadd.f32 %v1037_v7, %v1009_v62 }
 0x22d   : > { %1045 = vst [vmem:[#allocation2 + $0x18] sm:$0xff] %v1041_v12  ;;  %1061 = vadd.xlane.f32.xlu0 (!%p1239_p5), %v1056_v4 }
 0x232   : > { %v1052_v31 = vld [vmem:[#allocation2 + $0x10] sm:$0xff] }
 0x233   : > { %v1057_v6 = vmul.f32 %v1052_v31, %v1052_v31 }
 0x234   : > { %v1053_v21 = vld [vmem:[#allocation2 + $0x18] sm:$0xff] }
 0x235   : > { %1063 = vadd.xlane.f32.xlu1 %v1057_v6  ;;  %v1058_v34 = vmul.f32 %v1053_v21, %v1053_v21 }
 0x239   : > { %1065 = vadd.xlane.f32.xlu1 %v1058_v34 }
 0x2b6   : > { %v1060_v23 = vpop.xlane.xlu0 %1059 }
 0x2b7   : > { %v1068_v26 = vmul.f32 0.0078125, %v1060_v23 }
 0x2b9   : > { %v1072_v30 = vadd.f32 1e-05, %v1068_v26 }
 0x2ba   : > { %v1062_v32 = vpop.xlane.xlu0 %1061 }
 0x2bb   : > { %v1069_v28 = vmul.f32 0.0078125, %v1062_v32 }
 0x2bd   : > { %v1073_v37 = vadd.f32 1e-05, %v1069_v28 }
 0x2c2   : > { %v1064_v61 = vpop.xlane.xlu1 %1063 }
 0x2c3   : > { %v1070_v25 = vmul.f32 0.0078125, %v1064_v61 }
 0x2c5   : > { %v1074_v58 = vadd.f32 1e-05, %v1070_v25 }
 0x2c6   : > { %v1066_v15 = vpop.xlane.xlu1 %1065 }
 0x2c7   : > { %1411 = vrsqrt.f32 %v1074_v58  ;;  %v1071_v19 = vmul.f32 0.0078125, %v1066_v15 }
 0x2c8   : > { %1413 = vrsqrt.f32 %v1072_v30 }
 0x2c9   : > { %v1075_v35 = vadd.f32 1e-05, %v1071_v19 }
 0x2cb   : > { %1415 = vrsqrt.f32 %v1075_v35 }
 0x2cc   : > { %1417 = vrsqrt.f32 %v1073_v37 }
 0x2d1   : > { %v1412_v44 = vpop.eup %1411 }
 0x2d2   : > { %v1414_v11 = vpop.eup %1413  ;;  %v1082_v18 = vmul.f32 %v1412_v44, %v1052_v31 }
 0x2d3   : > { %v1080_v33 = vmul.f32 %v1414_v11, %v1050_v17 }
 0x2d4   : > { %v1092_v36 = vmul.f32 %v1240_v20, %v1082_v18 }
 0x2d5   : > { %v1416_v39 = vpop.eup %1415  ;;  %v1090_v43 = vmul.f32 %v1240_v20, %v1080_v33 }
 0x2d6   : > { %v1418_v45 = vpop.eup %1417  ;;  %v1100_v27 = vadd.f32 %v1096_v38, %v1092_v36  ;;  %v1083_v47 = vmul.f32 %v1416_v39, %v1053_v21 }
 0x2d7   : > { %v1098_v54 = vadd.f32 %v1094_v13, %v1090_v43  ;;  %v1081_v10 = vmul.f32 %v1418_v45, %v1051_v22 }
 0x2d8   : > { %1104 = vst [vmem:[#allocation3 + $0x10] sm:$0xff] %v1100_v27  ;;  %v1093_v49 = vmul.f32 %v1240_v20, %v1083_v47 }
 0x2d9   : > { %1102 = vst [vmem:[#allocation3] sm:$0xff] %v1098_v54  ;;  %v1091_v50 = vmul.f32 %v1240_v20, %v1081_v10 }
 0x2da   : > { %v1101_v41 = vadd.f32 %v1097_v60, %v1093_v49 }
 0x2db   : > { %v1099_v42 = vadd.f32 %v1095_v14, %v1091_v50 }
 0x2dc   : > { %1105 = vst [vmem:[#allocation3 + $0x18] sm:$0xff] %v1101_v41 }
 0x2dd   : > { %1103 = vst [vmem:[#allocation3 + $0x8] sm:$0xff] %v1099_v42 }
 0x2de PF: > { %p1296_p6 = scmp.eq.s32.totalorder %s1503_s22, 3  ;;  %s1459_s28 = smov [#allocation3]  }
 0x2df   : > { %s1112_s29 = sshll.u32 %s1459_s28, 4  ;;  %s1113_s29 = int_to_ptr.vmem [resolvable:$true] %s1112_s29 }
 0x2e0   : > { %s1419_s30 = scalar_lea.vmem %s1113_s29, 512  ;;  %p1426_p10 = scmp.lt.s32.totalorder %s1113_s29, %s1113_s29 }
 0x2e1   : > { %p1420_p7 = scmp.ne.s32.totalorder %s1113_s29, %s1419_s30  ;;  %p1427_p11 = scmp.lt.s32.totalorder %s1419_s30, %s1419_s30 }
 0x2e3   : > { %p1421_p8 = pnand %p1420_p7, %p1296_p6  ;;  %p1428_p12 = por %p1427_p11, %p1426_p10 }
 0x2e5   : > { %p1422_p9 = pneg %p1421_p8 }
 0x2e7   : > { %p1429_p13 = pnand %p1428_p12, %p1422_p9 }
 0x2e9   : > { %1432 = shalt.err (!%p1429_p13)
}
 0x2ea   : > { %s1433_s9 = scalar_lea.hbm %s1788_s6, 512 }
 0x2eb   : > { %p1434_p0 = scmp.ne.s32.totalorder %s1788_s6, %s1433_s9  ;;  %p1439_p3 = scmp.lt.u32.totalorder %s1433_s9, %s1788_s6 }
 0x2ed   : > { %p1435_p1 = pnand %p1434_p0, %p1296_p6 }
 0x2ef   : > { %p1436_p2 = pneg %p1435_p1 }
 0x2f1   : > { %p1441_p4 = pnand %p1439_p3, %p1436_p2 }
 0x2f3   : > { %1444 = shalt.err (!%p1441_p4)
}
 0x2f4   : > { %s1460_s14 = smov 128   ;;  %s1461_s15 = smov 8  }
 0x2f5   : > { %1293 = dma.vmem_to_hbm [thread:$0]  (%p1296_p6), %s1113_s29, 512, %s1788_s6, [#allocation4], %s1460_s14, %s1460_s14, %s1461_s15  }
 0x2f6   : > { %1450 = dma.done.wait (%p1296_p6), [#allocation4], 512  }
 0x2f7   : > { %1452 = vsyncadd (%p1296_p6), [#allocation4], 4294966784 }
 0x2f8 PF: > { %s17_s21 = sadd.s32 1, %s1455_s21  }
 0x2f9   : > { %p14_p5 = scmp.ge.s32.totalorder %s17_s21, 6  }
 0x2fb   :  { %16 = sbr.rel (!%p14_p5) target bundleno = 1 (0x1), region = 85 }
 0x302   :  { %1128 = vsyncpa [#allocation4], 1 }
 0x303   :  { %1130 = vsyncpa [#allocation4 + $0x1], 1 }

// kernel: decoder_layer_forward.2
= control target key start
LH: loop header
LB: loop body
LE: loop exit
PB: predicated region body
PF: predicated region fallthrough
CT: control target
= control target key end

     0   :  { %17 = vsyncpa [#allocation3], 0  ;;  %s2657_s17 = smov 0   ;;  %s3137_s0 = inlined_call_operand.vmem [shape: f32[32,128], index: 0, kind: input, shape index: {}]   ;;  %s3138_s1 = inlined_call_operand.vmem [shape: f32[1,128], index: 1, kind: input, shape index: {}]   ;;  %s3139_s2 = inlined_call_operand.vmem [shape: f32[128,256], index: 2, kind: input, shape index: {}]   ;;  %s3140_s3 = inlined_call_operand.vmem [shape: f32[32,32], index: 3, kind: input, shape index: {}]   ;;  %s3141_s4 = inlined_call_operand.vmem [shape: f32[32,32], index: 4, kind: input, shape index: {}]   ;;  %s3142_s5 = inlined_call_operand.hbm [shape: f32[128,128], index: 5, kind: input, shape index: {}]   ;;  %s3143_s6 = inlined_call_operand.vmem [shape: f32[1,128], index: 6, kind: input, shape index: {}]   ;;  %s3144_s7 = inlined_call_operand.vmem [shape: f32[1,128], index: 7, kind: input, shape index: {}]   ;;  %s3145_s8 = inlined_call_operand.vmem [shape: f32[128,4], index: 8, kind: input, shape index: {}]   ;;  %s3146_s9 = inlined_call_operand.vmem [shape: f32[32,128], index: 9, kind: output, shape index: {0}]   ;;  %s3147_s10 = inlined_call_operand.vmem [shape: bf16[32,128], index: 10, kind: output, shape index: {1}]   ;;  %s3148_s11 = inlined_call_operand.vmem [shape: f32[32,4], index: 11, kind: output, shape index: {2}]  }
   0x1 LB: > { %s2038_s18 = sadd.s32 4294967295, %s2584_s17   ;;  %p2040_p0 = scmp.ge.s32.totalorder %s2584_s17, 1  ;;  %s2584_s17 = sphi %s2657_s17, %s23_s17  }
   0x2   : > { %p310_p1 = scmp.lt.s32.totalorder %s2584_s17, 3  ;;  %s2586_s19 = smov [#allocation2]  }
   0x3   : > { %s328_s20 = sshll.u32 %s2586_s19, 4  ;;  %p2671_p3 = scmp.eq.s32.totalorder %s2038_s18, 0  ;;  %s329_s20 = int_to_ptr.vmem [resolvable:$true] %s328_s20 }
   0x4   : > { %p2665_p2 = pnand %p2040_p0, %p310_p1  ;;  %s2546_s26 = scalar_lea.hbm %s3142_s5, 2048 }
   0x5   : > { %s3153_s22 = scalar_select %p2671_p3, 1, 0 }
   0x6   : > { %s3152_s21 = scalar_select %p2665_p2, 1, 0 }
   0x7   : > { %p2429_p4 = pneg %p2665_p2  ;;  %p2547_p6 = scmp.ne.s32.totalorder %s3142_s5, %s2546_s26 }
   0x8   : > { %p2553_p10 = scmp.lt.u32.totalorder %s2546_s26, %s3142_s5 }
   0x9   : > { %p2679_p5 = pnand %p2671_p3, %p2429_p4 }
   0xb   : > { %p2548_p7 = pneg %p2679_p5 }
   0xd   : > { %p2549_p8 = pnand %p2548_p7, %p2547_p6 }
   0xf   : > { %p2550_p9 = pneg %p2549_p8 }
  0x11   : > { %p2555_p11 = pnand %p2553_p10, %p2550_p9 }
  0x13   : > { %2558 = shalt.err (!%p2555_p11)
}
  0x14   : > { %s2559_s12 = scalar_lea.vmem %s329_s20, 2048  ;;  %p2567_p1 = scmp.lt.s32.totalorder %s329_s20, %s329_s20 }
  0x15   : > { %p2560_p12 = scmp.ne.s32.totalorder %s329_s20, %s2559_s12  ;;  %p2568_p4 = scmp.lt.s32.totalorder %s2559_s12, %s2559_s12 }
  0x17   : > { %p2562_p13 = pnand %p2560_p12, %p2548_p7  ;;  %p2569_p3 = por %p2568_p4, %p2567_p1 }
  0x19   : > { %p2563_p0 = pneg %p2562_p13 }
  0x1b   : > { %p2570_p2 = pnand %p2569_p3, %p2563_p0 }
  0x1d   : > { %2573 = shalt.err (!%p2570_p2)
}
  0x1e   : > { %s2587_s13 = smov 128   ;;  %s2588_s14 = smov 8  }
  0x1f   : > { %2432 = dma.hbm_to_vmem [thread:$0]  (!%p2679_p5), %s3142_s5, 2048, %s329_s20, [#allocation3], %s2587_s13, %s2587_s13, %s2588_s14  }
  0x20   : > { %p3155_p6 = scmp.ne.s32.totalorder %s3152_s21, 0 }
  0x21   : > { %p3156_p8 = scmp.ne.s32.totalorder (!%p3155_p6), %s3153_s22, 0 }
  0x22   : > { %380 = sbr.rel (%p3155_p6) target bundleno = 3431 (0xd67), region = 56 }
  0x29   : > { %2579 = dma.done.wait (%p3156_p8), [#allocation3], 2048  }
  0x2a   : > { %2581 = vsyncadd (%p3156_p8), [#allocation3], 4294965248  ;;  %s2045_s19 = sshll.u32 %s2038_s18, 1  ;;  %v503_v2 = vld [vmem:[%s3139_s2 + $0x8] sm:$0xff]  ;;  %v505_v4 = vld [vmem:[%s3139_s2 + $0x18] sm:$0xff]  ;;  %v2589_v47 = vmov 0.0  }
  0x2b   : > { %p441_p2 = scmp.lt.s32.totalorder %s2045_s19, 3  ;;  %v502_v5 = vld [vmem:[%s3139_s2] sm:$0xff]  ;;  %v504_v6 = vld [vmem:[%s3139_s2 + $0x10] sm:$0xff]  ;;  %v2289_v7 = vpack.c.bf16 %v505_v4, %v503_v2  ;;  %v507_v9 = vld [vmem:[%s3139_s2 + $0x28] sm:$0xff]  ;;  %598 = vmatprep.mubr.f32.mxu0 %v2589_v47  ;;  %s2590_s29 = smov 16   ;;  %vm633_vm0 = vcmask 130048  }
  0x2c   : > { %v2291_v8 = vpack.c.bf16 %v504_v6, %v502_v5  ;;  %v509_v10 = vld [vmem:[%s3139_s2 + $0x38] sm:$0xff]  ;;  %v506_v11 = vld [vmem:[%s3139_s2 + $0x20] sm:$0xff]  ;;  %v508_v14 = vld [vmem:[%s3139_s2 + $0x30] sm:$0xff]  ;;  %s2591_s30 = smov 112   ;;  %s2592_s12 = smov 80   ;;  %vm704_vm1 = vcmask 261120  }
  0x2d   : > { %s3160_s19 = smov (!%p441_p2, %s2045_s19), 3  ;;  %v2293_v13 = vpack.c.bf16 %v509_v10, %v507_v9  ;;  %v511_v15 = vld [vmem:[%s3139_s2 + $0x48] sm:$0xff]  ;;  %v513_v16 = vld [vmem:[%s3139_s2 + $0x58] sm:$0xff]  ;;  %2290 = vmatprep.subr.bf16.mxu0 %v2289_v7  ;;  %v2295_v17 = vpack.c.bf16 %v508_v14, %v506_v11  ;;  %v510_v19 = vld [vmem:[%s3139_s2 + $0x40] sm:$0xff]  ;;  %s2593_s22 = smov 32   ;;  %vm1627_vm3 = vcmask 523264  }
  0x2e   : > { %s2710_s23 = sshll.u32 %s3160_s19, 3  ;;  %2292 = vmatpush1.bf16.msra.mxu0 %v2291_v8  ;;  %v2297_v18 = vpack.c.bf16 %v513_v16, %v511_v15  ;;  %v512_v20 = vld [vmem:[%s3139_s2 + $0x50] sm:$0xff]  ;;  %v515_v21 = vld [vmem:[%s3139_s2 + $0x68] sm:$0xff]  ;;  %v517_v22 = vld [vmem:[%s3139_s2 + $0x78] sm:$0xff]  ;;  %s2594_s18 = smov 96   ;;  %vm1630_vm4 = vcmask 785408  }
  0x2f   : > { %s2716_s21 = scalar_lea.vmem %s3137_s0, %s2710_s23  ;;  %2294 = vmatprep.subr.bf16.mxu0 %v2293_v13  ;;  %v2299_v23 = vpack.c.bf16 %v512_v20, %v510_v19  ;;  %v2301_v24 = vpack.c.bf16 %v517_v22, %v515_v21  ;;  %v514_v25 = vld [vmem:[%s3139_s2 + $0x60] sm:$0xff]  ;;  %v516_v26 = vld [vmem:[%s3139_s2 + $0x70] sm:$0xff]  ;;  %v519_v28 = vld [vmem:[%s3139_s2 + $0x88] sm:$0xff]  ;;  %s456_s15 = scalar_lea.vmem %s3141_s4, %s2710_s23  ;;  %vm1875_vm5 = vcmask 31744  }
  0x30   : > { %v2719_v0 = vld [vmem:[%s2716_s21] sm:$0xff]  ;;  %v2722_v1 = vld [vmem:[%s2716_s21 + $0x8] sm:$0xff]  ;;  %v2303_v27 = vpack.c.bf16 %v516_v26, %v514_v25  ;;  %v521_v29 = vld [vmem:[%s3139_s2 + $0x98] sm:$0xff]  ;;  %s450_s24 = scalar_lea.vmem %s3140_s3, %s2710_s23  ;;  %s2595_s25 = smov 64  }
  0x31   : > { %v479_v3 = vmul.f32 %v2719_v0, %v2719_v0  ;;  %v480_v12 = vmul.f32 %v2722_v1, %v2722_v1  ;;  %v2305_v30 = vpack.c.bf16 %v521_v29, %v519_v28  ;;  %v518_v31 = vld [vmem:[%s3139_s2 + $0x80] sm:$0xff]  ;;  %v520_v32 = vld [vmem:[%s3139_s2 + $0x90] sm:$0xff]  ;;  %v523_v34 = vld [vmem:[%s3139_s2 + $0xa8] sm:$0xff]  ;;  %s2596_s26 = smov 48   ;;  %s462_s28 = scalar_lea.vmem %s3146_s9, %s2710_s23 }
  0x32   : > { %2296 = vmatpush1.bf16.msra.mxu0 %v2295_v17  ;;  %v2307_v33 = vpack.c.bf16 %v520_v32, %v518_v31  ;;  %v525_v35 = vld [vmem:[%s3139_s2 + $0xb8] sm:$0xff]  ;;  %v522_v37 = vld [vmem:[%s3139_s2 + $0xa0] sm:$0xff]  ;;  %v524_v38 = vld [vmem:[%s3139_s2 + $0xb0] sm:$0xff] }
  0x33   : > { %481 = vadd.xlane.f32.xlu0 %v479_v3  ;;  %2298 = vmatprep.subr.bf16.mxu0 %v2297_v18  ;;  %v2309_v36 = vpack.c.bf16 %v525_v35, %v523_v34  ;;  %v2311_v39 = vpack.c.bf16 %v524_v38, %v522_v37  ;;  %v527_v40 = vld [vmem:[%s3139_s2 + $0xc8] sm:$0xff]  ;;  %v529_v41 = vld [vmem:[%s3139_s2 + $0xd8] sm:$0xff]  ;;  %v526_v42 = vld [vmem:[%s3139_s2 + $0xc0] sm:$0xff] }
  0x34   : > { %v2313_v43 = vpack.c.bf16 %v529_v41, %v527_v40  ;;  %v528_v44 = vld [vmem:[%s3139_s2 + $0xd0] sm:$0xff]  ;;  %v531_v45 = vld [vmem:[%s3139_s2 + $0xe8] sm:$0xff]  ;;  %v533_v46 = vld [vmem:[%s3139_s2 + $0xf8] sm:$0xff] }
  0x35   : > { %v2315_v48 = vpack.c.bf16 %v528_v44, %v526_v42  ;;  %v2317_v49 = vpack.c.bf16 %v533_v46, %v531_v45  ;;  %v530_v50 = vld [vmem:[%s3139_s2 + $0xe0] sm:$0xff]  ;;  %v532_v51 = vld [vmem:[%s3139_s2 + $0xf0] sm:$0xff]  ;;  %v2884_v18 = vld [vmem:[%s450_s24 + $0x8] sm:$0xff] }
  0x36   : > { %2300 = vmatpush1.bf16.msra.mxu0 %v2299_v23  ;;  %v2319_v52 = vpack.c.bf16 %v532_v51, %v530_v50  ;;  %v2057_v60 = vld [vmem:[%s3138_s1] ss:$0 sm:$0xff]  ;;  %v2886_v19 = vld [vmem:[%s456_s15 + $0x8] sm:$0xff]  ;;  %vm2898_vm2 = vmpackc.low %vm704_vm1, %vm704_vm1 }
  0x37   : > { %483 = vadd.xlane.f32.xlu0 %v480_v12  ;;  %2302 = vmatprep.subr.bf16.mxu0 %v2301_v24  ;;  %v2879_v15 = vld [vmem:[%s456_s15] sm:$0xff]  ;;  %s2054_s15 = sshll.u32 %s3160_s19, 2 }
  0x38   : > { %v2882_v17 = vld [vmem:[%s450_s24] sm:$0xff]  ;;  %s468_s24 = scalar_lea.vmem %s3147_s10, %s2054_s15 }
  0x3a   : > { %2304 = vmatpush1.bf16.msra.mxu0 %v2303_v27 }
  0x3b   : > { %2306 = vmatprep.subr.bf16.mxu0 %v2305_v30 }
  0x3e   : > { %2308 = vmatpush1.bf16.msra.mxu0 %v2307_v33 }
  0x3f   : > { %2310 = vmatprep.subr.bf16.mxu0 %v2309_v36 }
  0x42   : > { %2312 = vmatpush1.bf16.msra.mxu0 %v2311_v39 }
  0x43   : > { %2314 = vmatprep.subr.bf16.mxu0 %v2313_v43 }
  0x46   : > { %2316 = vmatpush1.bf16.msra.mxu0 %v2315_v48 }
  0x47   : > { %2318 = vmatprep.subr.bf16.mxu0 %v2317_v49 }
  0x4a   : > { %2320 = vmatpush1.bf16.msra.mxu0 %v2319_v52 }
  0xc0   : > { %v482_v53 = vpop.xlane.xlu0 %481 }
  0xc1   : > { %v486_v54 = vmul.f32 0.0078125, %v482_v53 }
  0xc3   : > { %v488_v55 = vadd.f32 1e-05, %v486_v54 }
  0xc4   : > { %v484_v56 = vpop.xlane.xlu0 %483 }
  0xc5   : > { %2484 = vrsqrt.f32 %v488_v55  ;;  %v487_v57 = vmul.f32 0.0078125, %v484_v56 }
  0xc7   : > { %v489_v58 = vadd.f32 1e-05, %v487_v57 }
  0xc9   : > { %2486 = vrsqrt.f32 %v489_v58 }
  0xcf   : > { %v2485_v59 = vpop.eup %2484 }
  0xd0   : > { %v492_v61 = vmul.f32 %v2485_v59, %v2719_v0 }
  0xd2   : > { %v500_v62 = vmul.f32 %v2057_v60, %v492_v61 }
  0xd3   : > { %v2487_v63 = vpop.eup %2486 }
  0xd4   : > { %599 = vmatmul.mubr.f32.vlgmr.msra.gmra.mrb[0].mxu0 %v500_v62  ;;  %v493_v2 = vmul.f32 %v2487_v63, %v2722_v1 }
  0xd5   : > { %604 = vmatprep.mubr.f32.mxu0 %v2589_v47 }
  0xd6   : > { %v501_v3 = vmul.f32 %v2057_v60, %v493_v2 }
  0xd8   : > { %605 = vmatmul.mubr.f32.gmra.mrb[2].mxu0 %v501_v3 }
 0x1a7   : > { %v2829_v4 = vpop.f32.mrb[0].mxu0 }
 0x1a8   : > { %v2831_v5 = vpop.f32.mrb[1].mxu0  ;;  %v2834_v6 = vsub.f32 0.0, %v2829_v4  ;;  %v698_v33 = vmul.f32 %v2882_v17, %v2829_v4 }
 0x1a9   : > { %627 = vrot.lane.b32.xlu0 %v2831_v5, %s2590_s29  ;;  %v615_v7 = vsub.f32 0.0, %v2831_v5  ;;  %v636_v23 = vmul.f32 %v2882_v17, %v2831_v5 }
 0x1aa   : > { %682 = vrot.lane.b32.xlu1 %v2834_v6, %s2591_s30 }
 0x1ab   : > { %v2840_v0 = vpop.f32.mrb[2].mxu0 }
 0x1ac   : > { %v2842_v1 = vpop.f32.mrb[3].mxu0  ;;  %v2863_v10 = vsub.f32 0.0, %v2840_v0  ;;  %v699_v38 = vmul.f32 %v2884_v18, %v2840_v0 }
 0x1ad   : > { %907 = vrot.lane.b32.xlu0 %v2834_v6, %s2592_s12  ;;  %v2849_v8 = vpack.i.bf16 %v2842_v1, %v2831_v5  ;;  %v616_v9 = vsub.f32 0.0, %v2842_v1  ;;  %v637_v24 = vmul.f32 %v2884_v18, %v2842_v1 }
 0x1ae   : > { %619 = vrot.lane.b32.xlu1 %v615_v7, %s2591_s30 }
 0x1b2   : > { %629 = vrot.lane.b32.xlu1 %v2842_v1, %s2590_s29 }
 0x1b6   : > { %621 = vrot.lane.b32.xlu1 %v616_v9, %s2591_s30 }
 0x1ba   : > { %690 = vrot.lane.b32.xlu1 %v2829_v4, %s2590_s29 }
 0x1be   : > { %684 = vrot.lane.b32.xlu1 %v2863_v10, %s2591_s30 }
 0x1c2   : > { %692 = vrot.lane.b32.xlu1 %v2840_v0, %s2590_s29 }
 0x1c6   : > { %913 = vrot.lane.b32.xlu1 %v2829_v4, %s2591_s30 }
 0x21b   : > { %v628_v13 = vpop.permute.xlu0 %627 }
 0x21c   : > { %v683_v11 = vpop.permute.xlu1 %682 }
 0x21f   : > { %v908_v52 = vpop.permute.xlu0 %907 }
 0x220   : > { %v620_v12 = vpop.permute.xlu1 %619 }
 0x221   : > { %v634_v16 = vsel %vm633_vm0, %v620_v12, %v628_v13 }
 0x222   : > { %v638_v20 = vmul.f32 %v634_v16, %v2879_v15 }
 0x224   : > { %v630_v14 = vpop.permute.xlu1 %629  ;;  %v640_v26 = vadd.f32 %v638_v20, %v636_v23 }
 0x228   : > { %v622_v21 = vpop.permute.xlu1 %621 }
 0x229   : > { %v635_v22 = vsel %vm633_vm0, %v622_v21, %v630_v14 }
 0x22a   : > { %v639_v25 = vmul.f32 %v635_v22, %v2886_v19 }
 0x22c   : > { %v641_v27 = vadd.f32 %v639_v25, %v637_v24  ;;  %v691_v28 = vpop.permute.xlu1 %690 }
 0x22d   : > { %v696_v29 = vsel %vm633_vm0, %v683_v11, %v691_v28 }
 0x22e   : > { %v2902_v31 = vpack.c.bf16 %v641_v27, %v640_v26  ;;  %v700_v32 = vmul.f32 %v696_v29, %v2879_v15 }
 0x230   : > { %v685_v34 = vpop.permute.xlu1 %684  ;;  %2323 = vmatprep.subr.msk.bf16.mxu1 %vm2898_vm2, %v2902_v31  ;;  %v702_v35 = vadd.f32 %v700_v32, %v698_v33 }
 0x231   : > { %2326 = vmatpush3.bf16.xpose.msk.msra.mxu1 %vm2898_vm2, %v2902_v31 }
 0x232   : > { %2167 = vmatprep.mubr.msk.f32.mxu1 %vm704_vm1, %v702_v35 }
 0x234   : > { %v693_v36 = vpop.permute.xlu1 %692 }
 0x235   : > { %v697_v37 = vsel %vm633_vm0, %v685_v34, %v693_v36 }
 0x236   : > { %v701_v39 = vmul.f32 %v697_v37, %v2886_v19 }
 0x238   : > { %v703_v40 = vadd.f32 %v701_v39, %v699_v38  ;;  %v914_v51 = vpop.permute.xlu1 %913 }
 0x239   : > { %v919_v53 = vsel %vm633_vm0, %v908_v52, %v914_v51 }
 0x23a   : > { %2168 = vmatmul.mubr.msk.f32.vlgmr.msra.gmra.mrb[0].mxu1 %vm704_vm1, %v703_v40  ;;  %v923_v54 = vmul.f32 %v919_v53, %v2879_v15 }
 0x30d   : > { %v2169_v41 = vpop.f32.mrb[0].mxu1 }
 0x30e   : > { %v793_v42 = vmul.f32 0.088388346, %v2169_v41  ;;  %v783_v43 = vpop.f32.mrb[1].mxu1 }
 0x30f   : > { %v792_v44 = vmul.f32 0.088388346, %v783_v43 }
 0x310   : > { %2488 = vtanh.f32 %v793_v42 }
 0x311   : > { %2490 = vtanh.f32 %v792_v44 }
 0x31a   : > { %v2489_v45 = vpop.eup %2488 }
 0x31b   : > { %v2491_v46 = vpop.eup %2490  ;;  %v797_v47 = vmul.f32 30.0, %v2489_v45 }
 0x31c   : > { %v796_v48 = vmul.f32 30.0, %v2491_v46 }
 0x31d   : > { %v801_v49 = vsel %vm633_vm0, %v797_v47, -inf }
 0x31e   : > { %802 = vmax.xlane.f32.xlu0 %v801_v49  ;;  %v798_v50 = vsel %vm633_vm0, %v796_v48, -inf }
 0x31f   : > { %799 = vmax.xlane.f32.xlu1 %v798_v50 }
 0x330   : > { %909 = vrot.lane.b32.xlu1 %v2863_v10, %s2592_s12 }
 0x334   : > { %915 = vrot.lane.b32.xlu0 %v2840_v0, %s2591_s30  ;;  %658 = vrot.lane.b32.xlu1 %v2882_v17, %s2593_s22 }
 0x338   : > { %927 = vrot.lane.b32.xlu1 %v923_v54, %s2593_s22  ;;  %660 = vrot.lane.b32.xlu0 %v2884_v18, %s2593_s22 }
 0x3ab   : > { %v803_v55 = vpop.xlane.xlu0 %802 }
 0x3ac   : > { %v800_v56 = vpop.xlane.xlu1 %799  ;;  %v805_v11 = vsub.f32 %v797_v47, %v803_v55 }
 0x3ad   : > { %v804_v13 = vsub.f32 %v796_v48, %v800_v56 }
 0x3ae   : > { %v808_v12 = vmul.f32 1.442695, %v805_v11 }
 0x3af   : > { %v916_v57 = vpop.permute.xlu0 %915  ;;  %v806_v14 = vmul.f32 1.442695, %v804_v13 }
 0x3b0   : > { %v910_v58 = vpop.permute.xlu1 %909  ;;  %2492 = vpow2.f32 %v808_v12 }
 0x3b1   : > { %v920_v59 = vsel %vm633_vm0, %v910_v58, %v916_v57  ;;  %2494 = vpow2.f32 %v806_v14 }
 0x3b2   : > { %v924_v60 = vmul.f32 %v920_v59, %v2886_v19 }
 0x3b3   : > { %v2955_v23 = vpop.permute.xlu0 %660 }
 0x3b4   : > { %v659_v61 = vpop.permute.xlu1 %658  ;;  %929 = vrot.lane.b32.xlu0 %v924_v60, %s2593_s22  ;;  %v922_v24 = vmul.f32 %v2955_v23, %v2840_v0 }
 0x3b5   : > { %v2936_v62 = vmul.f32 %v659_v61, %v2831_v5  ;;  %v921_v63 = vmul.f32 %v659_v61, %v2829_v4 }
 0x3b8   : > { %v928_v2 = vpop.permute.xlu1 %927 }
 0x3b9   : > { %v933_v3 = vadd.f32 %v928_v2, %v921_v63 }
 0x3ba   : > { %v2493_v16 = vpop.eup %2492 }
 0x3bb   : > { %937 = vrot.lane.b32.xlu1 %v933_v3, %s2594_s18  ;;  %v813_v20 = vsel %vm633_vm0, %v2493_v16, 0.0  ;;  %v2495_v21 = vpop.eup %2494 }
 0x3bc   : > { %v810_v22 = vsel %vm633_vm0, %v2495_v21, 0.0 }
 0x3d3   : > { %814 = vadd.xlane.f32.xlu0 %v813_v20 }
 0x3df   : > { %811 = vadd.xlane.f32.xlu1 %v810_v22 }
 0x3e9   : > { %2455 = vrot.lane.b32.xlu0 %v2849_v8, %s2595_s25 }
 0x3ed   : > { %642 = vrot.lane.b32.xlu0 %v615_v7, %s2592_s12 }
 0x3f1   : > { %648 = vrot.lane.b32.xlu0 %v2831_v5, %s2591_s30 }
 0x3f5   : > { %1129 = vrot.lane.b32.xlu0 %v2834_v6, %s2596_s26 }
 0x3f9   : > { %1131 = vrot.lane.b32.xlu0 %v2863_v10, %s2596_s26 }
 0x3fd   : > { %1373 = vrot.lane.b32.xlu0 %v2834_v6, %s2590_s29 }
 0x426   : > { %v930_v25 = vpop.permute.xlu0 %929 }
 0x427   : > { %v934_v7 = vadd.f32 %v930_v25, %v922_v24  ;;  %v665_v24 = vmul.f32 %v2955_v23, %v2842_v1 }
 0x429   : > { %939 = vrot.lane.b32.xlu1 %v934_v7, %s2594_s18 }
 0x42d   : > { %644 = vrot.lane.b32.xlu1 %v616_v9, %s2592_s12  ;;  %v938_v29 = vpop.permute.xlu1 %937 }
 0x431   : > { %650 = vrot.lane.b32.xlu1 %v2842_v1, %s2591_s30 }
 0x435   : > { %1135 = vrot.lane.b32.xlu1 %v2829_v4, %s2592_s12 }
 0x439   : > { %1137 = vrot.lane.b32.xlu1 %v2840_v0, %s2592_s12 }
 0x43d   : > { %1379 = vrot.lane.b32.xlu1 %v2829_v4, %s2596_s26 }
 0x460   : > { %v815_v5 = vpop.xlane.xlu0 %814 }
 0x461   : > { %2496 = vrcp.f32 %v815_v5 }
 0x464   : > { %v2456_v6 = vpop.permute.xlu0 %2455 }
 0x465   : > { %v2458_v26 = vunpack.i.h.bf16 %v2456_v6  ;;  %v2457_v27 = vunpack.i.l.bf16 %v2456_v6 }
 0x467   : > { %v2327_v28 = vpack.c.bf16 %v2458_v26, %v2457_v27 }
 0x468   : > { %v643_v49 = vpop.permute.xlu0 %642 }
 0x469   : > { %2328 = vmatprep.subr.bf16.mxu1 %v2327_v28 }
 0x46a   : > { %2330 = vmatpush3.bf16.msra.mxu1 %v2327_v28 }
 0x46b   : > { %2333 = vmatprep.subr.msk.bf16.mxu1 %vm2898_vm2, %v2902_v31  ;;  %v2497_v32 = vpop.eup %2496 }
 0x46c   : > { %v812_v9 = vpop.xlane.xlu1 %811  ;;  %v819_v35 = vmul.f32 %v2497_v32, %v2493_v16  ;;  %v649_v51 = vpop.permute.xlu0 %648 }
 0x46d   : > { %2498 = vrcp.f32 %v812_v9  ;;  %v654_v57 = vsel %vm633_vm0, %v643_v49, %v649_v51 }
 0x46e   : > { %v666_v60 = vmul.f32 %v654_v57, %v2879_v15 }
 0x470   : > { %v1130_v54 = vpop.permute.xlu0 %1129 }
 0x474   : > { %v1132_v58 = vpop.permute.xlu0 %1131 }
 0x477   : > { %v2499_v33 = vpop.eup %2498 }
 0x478   : > { %v817_v34 = vmul.f32 %v2499_v33, %v2495_v21  ;;  %v1374_v3 = vpop.permute.xlu0 %1373 }
 0x47a   : > { %2174 = vmatprep.mubr.msk.f32.mxu1 %vm633_vm0, %v817_v34 }
 0x47b   : > { %2175 = vmatmul.mubr.msk.f32.vlgmr.msra.gmra.mrb[2].mxu1 %vm633_vm0, %v819_v35 }
 0x47c   : > { %2336 = vmatpush3.bf16.xpose.msk.msra.mxu1 %vm2898_vm2, %v2902_v31  ;;  %2181 = vmatprep.mubr.msk.f32.mxu1 %vm704_vm1, %v938_v29 }
 0x47d   : > { %2338 = vmatprep.subr.bf16.mxu1 %v2327_v28 }
 0x49b   : > { %v940_v36 = vpop.permute.xlu1 %939 }
 0x49c   : > { %2182 = vmatmul.mubr.msk.f32.vlgmr.msra.gmra.mrb[4].mxu1 %vm704_vm1, %v940_v36 }
 0x49d   : > { %2340 = vmatpush3.bf16.msra.mxu1 %v2327_v28 }
 0x49f   : > { %v645_v48 = vpop.permute.xlu1 %644 }
 0x4a3   : > { %v651_v50 = vpop.permute.xlu1 %650 }
 0x4a4   : > { %v655_v53 = vsel %vm633_vm0, %v645_v48, %v651_v50 }
 0x4a5   : > { %v667_v55 = vmul.f32 %v655_v53, %v2886_v19 }
 0x4a7   : > { %v1136_v52 = vpop.permute.xlu1 %1135 }
 0x4a8   : > { %v1141_v63 = vsel %vm633_vm0, %v1130_v54, %v1136_v52 }
 0x4ab   : > { %v1138_v56 = vpop.permute.xlu1 %1137 }
 0x4ac   : > { %v1142_v59 = vsel %vm633_vm0, %v1132_v58, %v1138_v56 }
 0x4ad   : > { %v1152_v61 = vmul.f32 %v1142_v59, %v2886_v19 }
 0x4af   : > { %v1380_v2 = vpop.permute.xlu1 %1379 }
 0x4b0   : > { %v1385_v11 = vsel %vm633_vm0, %v1374_v3, %v1380_v2 }
 0x4b1   : > { %v1395_v12 = vmul.f32 %v1385_v11, %v2879_v15 }
 0x54e   : > { %v2981_v37 = vpop.f32.mrb[2].mxu1 }
 0x54f   : > { %v2983_v38 = vpop.f32.mrb[3].mxu1 }
 0x56f   : > { %v2183_v39 = vpop.f32.mrb[4].mxu1 }
 0x570   : > { %v1021_v40 = vmul.f32 0.088388346, %v2183_v39  ;;  %v1011_v41 = vpop.f32.mrb[5].mxu1 }
 0x571   : > { %v1020_v42 = vmul.f32 0.088388346, %v1011_v41 }
 0x572   : > { %2500 = vtanh.f32 %v1021_v40 }
 0x573   : > { %2502 = vtanh.f32 %v1020_v42 }
 0x57c   : > { %v2501_v43 = vpop.eup %2500 }
 0x57d   : > { %v2503_v44 = vpop.eup %2502  ;;  %v1025_v31 = vmul.f32 30.0, %v2501_v43 }
 0x57e   : > { %v1024_v45 = vmul.f32 30.0, %v2503_v44 }
 0x57f   : > { %v1029_v46 = vsel %vm633_vm0, %v1025_v31, -inf }
 0x580   : > { %1030 = vmax.xlane.f32.xlu1 %v1029_v46  ;;  %v1026_v47 = vsel %vm633_vm0, %v1024_v45, -inf }
 0x581   : > { %1027 = vmax.xlane.f32.xlu0 %v1026_v47 }
 0x591   : > { %1381 = vrot.lane.b32.xlu1 %v2840_v0, %s2596_s26 }
 0x595   : > { %672 = vrot.lane.b32.xlu1 %v667_v55, %s2593_s22 }
 0x597   : > { %1375 = vrot.lane.b32.xlu0 %v2863_v10, %s2590_s29  ;;  %v1151_v10 = vmul.f32 %v1141_v63, %v2879_v15 }
 0x599   : > { %1145 = vrot.lane.b32.xlu1 %v2884_v18, %s2595_s25 }
 0x59b   : > { %670 = vrot.lane.b32.xlu0 %v666_v60, %s2593_s22 }
 0x59d   : > { %1157 = vrot.lane.b32.xlu1 %v1152_v61, %s2595_s25 }
 0x59f   : > { %1143 = vrot.lane.b32.xlu0 %v2882_v17, %s2595_s25 }
 0x5a1   : > { %1389 = vrot.lane.b32.xlu1 %v2884_v18, %s2594_s18 }
 0x5a3   : > { %1155 = vrot.lane.b32.xlu0 %v1151_v10, %s2595_s25 }
 0x5a7   : > { %1387 = vrot.lane.b32.xlu0 %v2882_v17, %s2594_s18 }
 0x5ab   : > { %1399 = vrot.lane.b32.xlu0 %v1395_v12, %s2594_s18 }
 0x60d   : > { %v1031_v13 = vpop.xlane.xlu1 %1030 }
 0x60e   : > { %v1028_v14 = vpop.xlane.xlu0 %1027  ;;  %v1033_v28 = vsub.f32 %v1025_v31, %v1031_v13 }
 0x60f   : > { %v1032_v16 = vsub.f32 %v1024_v45, %v1028_v14 }
 0x610   : > { %v1036_v29 = vmul.f32 1.442695, %v1033_v28 }
 0x611   : > { %v1034_v20 = vmul.f32 1.442695, %v1032_v16  ;;  %v1382_v21 = vpop.permute.xlu1 %1381 }
 0x612   : > { %v1376_v22 = vpop.permute.xlu0 %1375 }
 0x613   : > { %2504 = vpow2.f32 %v1034_v20  ;;  %v1386_v18 = vsel %vm633_vm0, %v1376_v22, %v1382_v21 }
 0x614   : > { %v1396_v25 = vmul.f32 %v1386_v18, %v2886_v19  ;;  %2506 = vpow2.f32 %v1036_v29 }
 0x615   : > { %v673_v7 = vpop.permute.xlu1 %672 }
 0x616   : > { %v677_v17 = vadd.f32 %v673_v7, %v665_v24  ;;  %1401 = vrot.lane.b32.xlu1 %v1396_v25, %s2594_s18  ;;  %v671_v15 = vpop.permute.xlu0 %670 }
 0x617   : > { %v676_v5 = vadd.f32 %v671_v15, %v2936_v62 }
 0x619   : > { %v2459_v6 = vpack.i.bf16 %v677_v17, %v676_v5  ;;  %v1146_v9 = vpop.permute.xlu1 %1145 }
 0x61a   : > { %v1150_v1 = vmul.f32 %v1146_v9, %v2840_v0  ;;  %v1144_v33 = vpop.permute.xlu0 %1143 }
 0x61b   : > { %v1149_v36 = vmul.f32 %v1144_v33, %v2829_v4 }
 0x61d   : > { %v2505_v26 = vpop.eup %2504  ;;  %v1158_v32 = vpop.permute.xlu1 %1157 }
 0x61e   : > { %v1038_v27 = vsel %vm633_vm0, %v2505_v26, 0.0  ;;  %v2507_v19 = vpop.eup %2506  ;;  %v1162_v23 = vadd.f32 %v1158_v32, %v1150_v1  ;;  %v1156_v34 = vpop.permute.xlu0 %1155 }
 0x61f   : > { %1039 = vadd.xlane.f32.xlu0 %v1038_v27  ;;  %v1041_v62 = vsel %vm633_vm0, %v2507_v19, 0.0  ;;  %v1161_v39 = vadd.f32 %v1156_v34, %v1149_v36 }
 0x621   : > { %v1390_v43 = vpop.permute.xlu1 %1389 }
 0x622   : > { %v1388_v35 = vpop.permute.xlu0 %1387  ;;  %v1394_v44 = vmul.f32 %v1390_v43, %v2840_v0 }
 0x623   : > { %v1393_v41 = vmul.f32 %v1388_v35, %v2829_v4 }
 0x626   : > { %v1400_v40 = vpop.permute.xlu0 %1399 }
 0x627   : > { %v1405_v42 = vadd.f32 %v1400_v40, %v1393_v41 }
 0x635   : > { %2460 = vrot.lane.b32.xlu0 %v2459_v6, %s2594_s18 }
 0x639   : > { %1167 = vrot.lane.b32.xlu0 %v1162_v23, %s2595_s25 }
 0x63a   : > { %1042 = vadd.xlane.f32.xlu1 %v1041_v62 }
 0x64b   : > { %1165 = vrot.lane.b32.xlu1 %v1161_v39, %s2595_s25 }
 0x64f   : > { %1409 = vrot.lane.b32.xlu1 %v1405_v42, %s2593_s22 }
 0x688   : > { %v1402_v31 = vpop.permute.xlu1 %1401 }
 0x689   : > { %v1406_v45 = vadd.f32 %v1402_v31, %v1394_v44 }
 0x68b   : > { %1411 = vrot.lane.b32.xlu0 %v1406_v45, %s2593_s22 }
 0x6ac   : > { %v1040_v46 = vpop.xlane.xlu0 %1039 }
 0x6ad   : > { %2508 = vrcp.f32 %v1040_v46 }
 0x6b0   : > { %v2461_v47 = vpop.permute.xlu0 %2460 }
 0x6b1   : > { %v2463_v48 = vunpack.i.h.bf16 %v2461_v47  ;;  %v2462_v49 = vunpack.i.l.bf16 %v2461_v47 }
 0x6b3   : > { %v2341_v50 = vpack.c.bf16 %v2463_v48, %v2462_v49 }
 0x6b4   : > { %v1168_v56 = vpop.permute.xlu0 %1167 }
 0x6b5   : > { %2343 = vmatprep.subr.msk.bf16.mxu1 %vm2898_vm2, %v2341_v50  ;;  %2353 = vmatprep.subr.msk.bf16.mxu0 %vm2898_vm2, %v2341_v50 }
 0x6b6   : > { %2356 = vmatpush3.bf16.xpose.msk.msra.mxu0 %vm2898_vm2, %v2341_v50 }
 0x6b7   : > { %v2509_v4 = vpop.eup %2508 }
 0x6b8   : > { %v1045_v0 = vmul.f32 %v2509_v4, %v2505_v26 }
 0x6ba   : > { %2188 = vmatprep.mubr.msk.f32.mxu1 %vm633_vm0, %v1045_v0 }
 0x6c7   : > { %v1043_v51 = vpop.xlane.xlu1 %1042 }
 0x6c8   : > { %2510 = vrcp.f32 %v1043_v51 }
 0x6cb   : > { %v1166_v52 = vpop.permute.xlu1 %1165 }
 0x6cf   : > { %v1410_v53 = vpop.permute.xlu1 %1409 }
 0x6d0   : > { %2209 = vmatprep.mubr.msk.f32.mxu0 %vm704_vm1, %v1410_v53 }
 0x6d2   : > { %v2511_v54 = vpop.eup %2510 }
 0x6d3   : > { %v1047_v55 = vmul.f32 %v2511_v54, %v2507_v19 }
 0x6d5   : > { %2189 = vmatmul.mubr.msk.f32.vlgmr.msra.gmra.mrb[6].mxu1 %vm633_vm0, %v1047_v55  ;;  %v1633_v55 = vld [vmem:[#allocation2] sm:$0xff] }
 0x6d6   : > { %2346 = vmatpush3.bf16.xpose.msk.msra.mxu1 %vm2898_vm2, %v2341_v50  ;;  %2195 = vmatprep.mubr.msk.f32.mxu1 %vm704_vm1, %v1166_v52 }
 0x6dd   : > { %2196 = vmatmul.mubr.msk.f32.vlgmr.msra.gmra.mrb[8].mxu1 %vm704_vm1, %v1168_v56  ;;  %v1634_v56 = vld [vmem:[#allocation2 + $0x8] sm:$0xff] }
 0x6fd   : > { %v1412_v57 = vpop.permute.xlu0 %1411 }
 0x6fe   : > { %2210 = vmatmul.mubr.msk.f32.vlgmr.msra.gmra.mrb[4].mxu0 %vm704_vm1, %v1412_v57  ;;  %v1635_v57 = vld [vmem:[#allocation2 + $0x10] sm:$0xff] }
 0x7a8   : > { %v2190_v58 = vpop.f32.mrb[6].mxu1 }
 0x7a9   : > { %v1120_v59 = vpop.f32.mrb[7].mxu1 }
 0x7aa   : > { %v2469_v60 = vpack.i.bf16 %v2190_v58, %v1120_v59  ;;  %v2361_v58 = vpack.c.bf16 %v1634_v56, %v1633_v55  ;;  %v1636_v59 = vld [vmem:[#allocation2 + $0x18] sm:$0xff]  ;;  %v2082_v56 = vld [vmem:[%s3143_s6] ss:$0 sm:$0xff] }
 0x7ac   : > { %2362 = vmatprep.subr.bf16.mxu0 %v2361_v58 }
 0x7ad   : > { %2364 = vmatpush3.bf16.msra.mxu0 %v2361_v58 }
 0x7b0   : > { %v2197_v61 = vpop.f32.mrb[8].mxu1 }
 0x7b1   : > { %v1259_v63 = vmul.f32 0.088388346, %v2197_v61  ;;  %v1249_v10 = vpop.f32.mrb[9].mxu1  ;;  %v1637_v61 = vld [vmem:[#allocation2 + $0x20] sm:$0xff] }
 0x7b2   : > { %v1258_v2 = vmul.f32 0.088388346, %v1249_v10 }
 0x7b3   : > { %2512 = vtanh.f32 %v1259_v63  ;;  %v1638_v63 = vld [vmem:[#allocation2 + $0x28] sm:$0xff] }
 0x7b4   : > { %2514 = vtanh.f32 %v1258_v2  ;;  %v2369_v10 = vpack.c.bf16 %v1638_v63, %v1637_v61  ;;  %v1639_v2 = vld [vmem:[#allocation2 + $0x30] sm:$0xff]  ;;  %v2544_v63 = vld [vmem:[%s2716_s21 + $0x8] sm:$0xff] }
 0x7bd   : > { %v2513_v3 = vpop.eup %2512 }
 0x7be   : > { %v2515_v30 = vpop.eup %2514  ;;  %v1263_v11 = vmul.f32 30.0, %v2513_v3  ;;  %v1640_v3 = vld [vmem:[#allocation2 + $0x38] sm:$0xff] }
 0x7bf   : > { %v1262_v12 = vmul.f32 30.0, %v2515_v30  ;;  %v2373_v30 = vpack.c.bf16 %v1640_v3, %v1639_v2  ;;  %v2545_v2 = vld [vmem:[%s2716_s21] sm:$0xff] }
 0x7c0   : > { %v1267_v13 = vsel %vm633_vm0, %v1263_v11, -inf }
 0x7c1   : > { %1268 = vmax.xlane.f32.xlu0 %v1267_v13  ;;  %v1264_v14 = vsel %vm633_vm0, %v1262_v12, -inf }
 0x7c2   : > { %1265 = vmax.xlane.f32.xlu1 %v1264_v14  ;;  %v1643_v14 = vld [vmem:[#allocation2 + $0x50] sm:$0xff] }
 0x7d1   : > { %v2211_v16 = vpop.f32.mrb[4].mxu0 }
 0x7d2   : > { %v1493_v20 = vmul.f32 0.088388346, %v2211_v16  ;;  %v1483_v21 = vpop.f32.mrb[5].mxu0  ;;  %v1644_v16 = vld [vmem:[#allocation2 + $0x58] sm:$0xff] }
 0x7d3   : > { %v1492_v22 = vmul.f32 0.088388346, %v1483_v21  ;;  %v1645_v21 = vld [vmem:[#allocation2 + $0x60] sm:$0xff] }
 0x7d4   : > { %2516 = vtanh.f32 %v1493_v20  ;;  %v2381_v20 = vpack.c.bf16 %v1644_v16, %v1643_v14  ;;  %v1792_v16 = vld [vmem:[%s3145_s8 + $0x40] sm:$0xff] }
 0x7d5   : > { %2518 = vtanh.f32 %v1492_v22  ;;  %v1646_v22 = vld [vmem:[#allocation2 + $0x68] sm:$0xff] }
 0x7de   : > { %v2517_v18 = vpop.eup %2516 }
 0x7df   : > { %v2519_v24 = vpop.eup %2518  ;;  %v1497_v25 = vmul.f32 30.0, %v2517_v18  ;;  %v2385_v18 = vpack.c.bf16 %v1646_v22, %v1645_v21  ;;  %v1794_v22 = vld [vmem:[%s3145_s8 + $0x50] sm:$0xff] }
 0x7e0   : > { %v1496_v7 = vmul.f32 30.0, %v2519_v24  ;;  %v1647_v24 = vld [vmem:[#allocation2 + $0x70] sm:$0xff] }
 0x7e1   : > { %v1501_v17 = vsel %vm633_vm0, %v1497_v25, -inf }
 0x7e2   : > { %1502 = vmax.xlane.f32.xlu1 %v1501_v17  ;;  %v1498_v15 = vsel %vm633_vm0, %v1496_v7, -inf }
 0x7e3   : > { %1499 = vmax.xlane.f32.xlu0 %v1498_v15 }
 0x84e   : > { %v1269_v5 = vpop.xlane.xlu0 %1268 }
 0x84f   : > { %v1271_v6 = vsub.f32 %v1263_v11, %v1269_v5  ;;  %v1266_v29 = vpop.xlane.xlu1 %1265  ;;  %v1641_v11 = vld [vmem:[#allocation2 + $0x40] sm:$0xff] }
 0x850   : > { %v1270_v9 = vsub.f32 %v1262_v12, %v1266_v29  ;;  %v1642_v12 = vld [vmem:[#allocation2 + $0x48] sm:$0xff] }
 0x851   : > { %v1274_v26 = vmul.f32 1.442695, %v1271_v6  ;;  %v2377_v13 = vpack.c.bf16 %v1642_v12, %v1641_v11  ;;  %v1790_v12 = vld [vmem:[%s3145_s8 + $0x30] sm:$0xff] }
 0x852   : > { %v1272_v62 = vmul.f32 1.442695, %v1270_v9 }
 0x853   : > { %2520 = vpow2.f32 %v1274_v26 }
 0x85d   : > { %v2521_v27 = vpop.eup %2520 }
 0x85e   : > { %v1279_v28 = vsel %vm633_vm0, %v2521_v27, 0.0 }
 0x85f   : > { %1280 = vadd.xlane.f32.xlu1 %v1279_v28 }
 0x86f   : > { %v1503_v32 = vpop.xlane.xlu1 %1502 }
 0x870   : > { %v1505_v1 = vsub.f32 %v1497_v25, %v1503_v32  ;;  %v1500_v19 = vpop.xlane.xlu0 %1499  ;;  %v1648_v25 = vld [vmem:[#allocation2 + $0x78] sm:$0xff] }
 0x871   : > { %v1504_v23 = vsub.f32 %v1496_v7, %v1500_v19  ;;  %v2389_v7 = vpack.c.bf16 %v1648_v25, %v1647_v24  ;;  %v1796_v24 = vld [vmem:[%s3145_s8 + $0x60] sm:$0xff] }
 0x872   : > { %v1508_v33 = vmul.f32 1.442695, %v1505_v1 }
 0x873   : > { %v1506_v34 = vmul.f32 1.442695, %v1504_v23 }
 0x874   : > { %2522 = vpow2.f32 %v1508_v33 }
 0x875   : > { %2524 = vpow2.f32 %v1506_v34 }
 0x876   : > { %2526 = vpow2.f32 %v1272_v62 }
 0x87e   : > { %v2523_v35 = vpop.eup %2522 }
 0x87f   : > { %v2525_v36 = vpop.eup %2524  ;;  %v1513_v39 = vsel %vm633_vm0, %v2523_v35, 0.0 }
 0x880   : > { %1514 = vadd.xlane.f32.xlu1 %v1513_v39  ;;  %v1510_v40 = vsel %vm633_vm0, %v2525_v36, 0.0  ;;  %v2527_v41 = vpop.eup %2526 }
 0x881   : > { %1511 = vadd.xlane.f32.xlu0 %v1510_v40  ;;  %v1276_v42 = vsel %vm633_vm0, %v2527_v41, 0.0 }
 0x885   : > { %1277 = vadd.xlane.f32.xlu0 %v1276_v42 }
 0x891   : > { %2470 = vrot.lane.b32.xlu1 %v2469_v60, %s2593_s22  ;;  %v2365_v60 = vpack.c.bf16 %v1636_v59, %v1635_v57 }
 0x893   : > { %2366 = vmatprep.subr.bf16.mxu0 %v2365_v60 }
 0x894   : > { %2368 = vmatpush3.bf16.msra.mxu0 %v2365_v60 }
 0x895   : > { %2370 = vmatprep.subr.bf16.mxu0 %v2369_v10 }
 0x898   : > { %2372 = vmatpush3.bf16.msra.mxu0 %v2369_v10 }
 0x899   : > { %2374 = vmatprep.subr.bf16.mxu0 %v2373_v30 }
 0x89b   : > { %2465 = vrot.lane.b32.xlu0 %v2849_v8, %s2593_s22 }
 0x89c   : > { %2376 = vmatpush3.bf16.msra.mxu0 %v2373_v30 }
 0x89d   : > { %2378 = vmatprep.subr.bf16.mxu0 %v2377_v13 }
 0x8a0   : > { %2380 = vmatpush3.bf16.msra.mxu0 %v2377_v13  ;;  %v1791_v13 = vld [vmem:[%s3145_s8 + $0x38] sm:$0xff] }
 0x8a1   : > { %2382 = vmatprep.subr.bf16.mxu0 %v2381_v20  ;;  %v2405_v14 = vpack.c.bf16 %v1791_v13, %v1790_v12 }
 0x8a4   : > { %2384 = vmatpush3.bf16.msra.mxu0 %v2381_v20  ;;  %v1793_v20 = vld [vmem:[%s3145_s8 + $0x48] sm:$0xff] }
 0x8a5   : > { %2386 = vmatprep.subr.bf16.mxu0 %v2385_v18  ;;  %v2409_v21 = vpack.c.bf16 %v1793_v20, %v1792_v16 }
 0x8a8   : > { %2388 = vmatpush3.bf16.msra.mxu0 %v2385_v18  ;;  %v1795_v18 = vld [vmem:[%s3145_s8 + $0x58] sm:$0xff] }
 0x8a9   : > { %2390 = vmatprep.subr.bf16.mxu0 %v2389_v7  ;;  %v2413_v25 = vpack.c.bf16 %v1795_v18, %v1794_v22 }
 0x8ac   : > { %2392 = vmatpush3.bf16.msra.mxu0 %v2389_v7  ;;  %v1797_v7 = vld [vmem:[%s3145_s8 + $0x68] sm:$0xff] }
 0x8ec   : > { %v1281_v43 = vpop.xlane.xlu1 %1280 }
 0x8ed   : > { %2528 = vrcp.f32 %v1281_v43 }
 0x8f7   : > { %v2529_v50 = vpop.eup %2528 }
 0x8f8   : > { %v1285_v8 = vmul.f32 %v2529_v50, %v2521_v27  ;;  %v1789_v50 = vld [vmem:[%s3145_s8 + $0x28] sm:$0xff] }
 0x90d   : > { %v1515_v45 = vpop.xlane.xlu1 %1514 }
 0x90e   : > { %v1512_v44 = vpop.xlane.xlu0 %1511 }
 0x90f   : > { %2530 = vrcp.f32 %v1512_v44 }
 0x911   : > { %v2471_v28 = vpop.permute.xlu1 %2470 }
 0x912   : > { %v1278_v31 = vpop.xlane.xlu0 %1277  ;;  %v2473_v9 = vunpack.i.h.bf16 %v2471_v28  ;;  %v2472_v32 = vunpack.i.l.bf16 %v2471_v28 }
 0x913   : > { %2532 = vrcp.f32 %v1278_v31 }
 0x914   : > { %2534 = vrcp.f32 %v1515_v45  ;;  %v1626_v33 = vsel %vm704_vm1, %v2981_v37, %v2473_v9  ;;  %v1784_v37 = vld [vmem:[%s3145_s8] sm:$0xff]  ;;  %v1786_v45 = vld [vmem:[%s3145_s8 + $0x10] sm:$0xff] }
 0x916   : > { %v2466_v46 = vpop.permute.xlu0 %2465 }
 0x917   : > { %v2468_v47 = vunpack.i.h.bf16 %v2466_v46  ;;  %v2467_v48 = vunpack.i.l.bf16 %v2466_v46 }
 0x919   : > { %v2347_v49 = vpack.c.bf16 %v2468_v47, %v2467_v48  ;;  %v2531_v4 = vpop.eup %2530  ;;  %v1787_v47 = vld [vmem:[%s3145_s8 + $0x18] sm:$0xff] }
 0x91a   : > { %v1517_v53 = vmul.f32 %v2531_v4, %v2525_v36  ;;  %v2397_v48 = vpack.c.bf16 %v1787_v47, %v1786_v45 }
 0x91b   : > { %2348 = vmatprep.subr.bf16.mxu1 %v2347_v49 }
 0x91c   : > { %2350 = vmatpush3.bf16.msra.mxu1 %v2347_v49 }
 0x91d   : > { %v2533_v0 = vpop.eup %2532  ;;  %2358 = vmatprep.subr.bf16.mxu1 %v2347_v49 }
 0x91e   : > { %v1283_v51 = vmul.f32 %v2533_v0, %v2527_v41  ;;  %v2535_v52 = vpop.eup %2534 }
 0x91f   : > { %v1519_v54 = vmul.f32 %v2535_v52, %v2523_v35  ;;  %v1625_v35 = vsel %vm704_vm1, %v2983_v38, %v2472_v32  ;;  %v1785_v38 = vld [vmem:[%s3145_s8 + $0x8] sm:$0xff] }
 0x920   : > { %2202 = vmatprep.mubr.msk.f32.mxu1 %vm633_vm0, %v1283_v51  ;;  %v2393_v46 = vpack.c.bf16 %v1785_v38, %v1784_v37 }
 0x921   : > { %2203 = vmatmul.mubr.msk.f32.vlgmr.msra.gmra.mrb[10].mxu1 %vm633_vm0, %v1285_v8 }
 0x922   : > { %2360 = vmatpush3.bf16.msra.mxu1 %v2347_v49  ;;  %2216 = vmatprep.mubr.msk.f32.mxu1 %vm633_vm0, %v1517_v53  ;;  %v1788_v49 = vld [vmem:[%s3145_s8 + $0x20] sm:$0xff] }
 0x923   : > { %2394 = vmatprep.subr.bf16.mxu1 %v2393_v46  ;;  %v2401_v4 = vpack.c.bf16 %v1789_v50, %v1788_v49 }
 0x925   : > { %2217 = vmatmul.mubr.msk.f32.vlgmr.msra.gmra.mrb[12].mxu1 %vm633_vm0, %v1519_v54 }
 0x926   : > { %2396 = vmatpush3.bf16.msra.mxu1 %v2393_v46 }
 0x927   : > { %2398 = vmatprep.subr.bf16.mxu1 %v2397_v48 }
 0x92a   : > { %2400 = vmatpush3.bf16.msra.mxu1 %v2397_v48 }
 0x92b   : > { %2402 = vmatprep.subr.bf16.mxu1 %v2401_v4 }
 0x92e   : > { %2404 = vmatpush3.bf16.msra.mxu1 %v2401_v4 }
 0x92f   : > { %2406 = vmatprep.subr.bf16.mxu1 %v2405_v14 }
 0x932   : > { %2408 = vmatpush3.bf16.msra.mxu1 %v2405_v14 }
 0x933   : > { %2410 = vmatprep.subr.bf16.mxu1 %v2409_v21 }
 0x936   : > { %2412 = vmatpush3.bf16.msra.mxu1 %v2409_v21 }
 0x937   : > { %2414 = vmatprep.subr.bf16.mxu1 %v2413_v25 }
 0x93a   : > { %2416 = vmatpush3.bf16.msra.mxu1 %v2413_v25 }
 0x9f4   : > { %v2204_v17 = vpop.f32.mrb[10].mxu1 }
 0x9f5   : > { %v1364_v15 = vpop.f32.mrb[11].mxu1 }
 0x9f6   : > { %v2474_v5 = vpack.i.bf16 %v2204_v17, %v1364_v15  ;;  %v2417_v17 = vpack.c.bf16 %v1797_v7, %v1796_v24  ;;  %v1798_v15 = vld [vmem:[%s3145_s8 + $0x70] sm:$0xff] }
 0x9f8   : > { %2475 = vrot.lane.b32.xlu1 %v2474_v5, %s2595_s25  ;;  %v2218_v6 = vpop.f32.mrb[12].mxu1  ;;  %v1799_v5 = vld [vmem:[%s3145_s8 + $0x78] sm:$0xff]  ;;  %2418 = vmatprep.subr.bf16.mxu1 %v2417_v17  ;;  %s474_s25 = scalar_lea.vmem %s3148_s11, %s2710_s23 }
 0x9f9   : > { %v1592_v26 = vpop.f32.mrb[13].mxu1  ;;  %2420 = vmatpush3.bf16.msra.mxu1 %v2417_v17 }
 0x9fa   : > { %v2479_v27 = vpack.i.bf16 %v2218_v6, %v1592_v26  ;;  %v2421_v6 = vpack.c.bf16 %v1799_v5, %v1798_v15 }
 0x9fc   : > { %2480 = vrot.lane.b32.xlu0 %v2479_v27, %s2594_s18  ;;  %2422 = vmatprep.subr.bf16.mxu1 %v2421_v6 }
 0x9fd   : > { %2424 = vmatpush3.bf16.msra.mxu1 %v2421_v6 }
 0xa6a   : > { %v2476_v29 = vpop.permute.xlu1 %2475 }
 0xa6b   : > { %v2478_v1 = vunpack.i.h.bf16 %v2476_v29  ;;  %v2477_v19 = vunpack.i.l.bf16 %v2476_v29 }
 0xa6d   : > { %v1628_v36 = vsel %vm1627_vm3, %v1625_v35, %v2477_v19  ;;  %v1629_v39 = vsel %vm1627_vm3, %v1626_v33, %v2478_v1  ;;  %v2083_v19 = vld [vmem:[%s3144_s7] ss:$0 sm:$0xff] }
 0xa6e   : > { %v2481_v23 = vpop.permute.xlu0 %2480 }
 0xa6f   : > { %v2483_v62 = vunpack.i.h.bf16 %v2481_v23  ;;  %v2482_v34 = vunpack.i.l.bf16 %v2481_v23 }
 0xa71   : > { %v1631_v40 = vsel %vm1630_vm4, %v1628_v36, %v2482_v34  ;;  %v1632_v41 = vsel %vm1630_vm4, %v1629_v39, %v2483_v62 }
 0xa72   : > { %2251 = vmatprep.mubr.f32.mxu0 %v1631_v40 }
 0xa73   : > { %2252 = vmatmul.mubr.f32.vlgmr.msra.gmra.mrb[6].mxu0 %v1632_v41 }
 0xb46   : > { %v2253_v42 = vpop.f32.mrb[6].mxu0 }
 0xb47   : > { %v1715_v43 = vpop.f32.mrb[7].mxu0  ;;  %v1726_v44 = vmul.f32 %v2253_v42, %v2253_v42 }
 0xb48   : > { %v1725_v31 = vmul.f32 %v1715_v43, %v1715_v43 }
 0xb49   : > { %1729 = vadd.xlane.f32.xlu0 %v1726_v44 }
 0xb4a   : > { %1727 = vadd.xlane.f32.xlu1 %v1725_v31 }
 0xbd6   : > { %v1730_v0 = vpop.xlane.xlu0 %1729 }
 0xbd7   : > { %v1732_v51 = vmul.f32 0.0078125, %v1730_v0  ;;  %v1728_v8 = vpop.xlane.xlu1 %1727 }
 0xbd8   : > { %v1731_v52 = vmul.f32 0.0078125, %v1728_v8 }
 0xbd9   : > { %v1734_v53 = vadd.f32 1e-05, %v1732_v51 }
 0xbda   : > { %v1733_v54 = vadd.f32 1e-05, %v1731_v52 }
 0xbdb   : > { %2536 = vrsqrt.f32 %v1734_v53 }
 0xbdc   : > { %2538 = vrsqrt.f32 %v1733_v54 }
 0xbe5   : > { %v2537_v55 = vpop.eup %2536 }
 0xbe6   : > { %v2539_v57 = vpop.eup %2538  ;;  %v1738_v58 = vmul.f32 %v2537_v55, %v2253_v42 }
 0xbe7   : > { %v1737_v59 = vmul.f32 %v2539_v57, %v1715_v43 }
 0xbe8   : > { %v1746_v60 = vmul.f32 %v2082_v56, %v1738_v58 }
 0xbe9   : > { %v1745_v61 = vmul.f32 %v2082_v56, %v1737_v59 }
 0xbea   : > { %v1748_v10 = vadd.f32 %v2544_v63, %v1746_v60 }
 0xbeb   : > { %v1747_v3 = vadd.f32 %v2545_v2, %v1745_v61 }
 0xbec   : > { %v1753_v30 = vmul.f32 %v1748_v10, %v1748_v10  ;;  %1750 = vst [vmem:[%s462_s28 + $0x8] sm:$0xff] %v1748_v10 }
 0xbed   : > { %v1752_v11 = vmul.f32 %v1747_v3, %v1747_v3  ;;  %1749 = vst [vmem:[%s462_s28] sm:$0xff] %v1747_v3 }
 0xbee   : > { %1756 = vadd.xlane.f32.xlu1 %v1753_v30 }
 0xbef   : > { %1754 = vadd.xlane.f32.xlu0 %v1752_v11 }
 0xc7b   : > { %v1757_v26 = vpop.xlane.xlu1 %1756 }
 0xc7c   : > { %v1759_v27 = vmul.f32 0.0078125, %v1757_v26  ;;  %v1755_v28 = vpop.xlane.xlu0 %1754 }
 0xc7d   : > { %v1758_v29 = vmul.f32 0.0078125, %v1755_v28 }
 0xc7e   : > { %v1761_v9 = vadd.f32 1e-05, %v1759_v27 }
 0xc7f   : > { %v1760_v32 = vadd.f32 1e-05, %v1758_v29 }
 0xc80   : > { %2540 = vrsqrt.f32 %v1761_v9 }
 0xc81   : > { %2542 = vrsqrt.f32 %v1760_v32 }
 0xc8a   : > { %v2541_v1 = vpop.eup %2540 }
 0xc8b   : > { %v2543_v23 = vpop.eup %2542  ;;  %v1765_v33 = vmul.f32 %v2541_v1, %v1748_v10 }
 0xc8c   : > { %v1764_v62 = vmul.f32 %v2543_v23, %v1747_v3 }
 0xc8d   : > { %v1773_v34 = vmul.f32 %v2083_v19, %v1765_v33 }
 0xc8e   : > { %v1772_v35 = vmul.f32 %v2083_v19, %v1764_v62 }
 0xc90   : > { %v2093_v36 = vpack.c.bf16 %v1773_v34, %v1772_v35  ;;  %2286 = vmatprep.mubr.f32.mxu1 %v1772_v35 }
 0xc91   : > { %2287 = vmatmul.mubr.f32.vlgmr.msra.gmra.mrb[14].mxu1 %v1773_v34 }
 0xc92   : > { %2094 = vst [vmem:[%s468_s24] sm:$0xff] %v2093_v36  }
 0xd64   : > { %v2288_v39 = vpop.f32.mrb[14].mxu1 }
 0xd65   : > { %v1866_v40 = vpop.f32.mrb[15].mxu1  ;;  %1877 = vst.msk [vmem:[%s474_s25 + $0x8] sm:$0xff] %vm1875_vm5, %v2288_v39 }
 0xd66   : > { %1876 = vst.msk [vmem:[%s474_s25] sm:$0xff] %vm1875_vm5, %v1866_v40 }
 0xd67 PF: > { %s23_s17 = sadd.s32 1, %s2584_s17  }
 0xd68   : > { %p20_p3 = scmp.ge.s32.totalorder %s23_s17, 4  }
 0xd6a   :  { %22 = sbr.rel (!%p20_p3) target bundleno = 1 (0x1), region = 121 }
 0xd71   :  { %1934 = vsyncpa [#allocation3], 1 }
 0xd72   :  { %1936 = vsyncpa [#allocation3 + $0x1], 1 }

</bundles_post_ra>
